<compile_context>
chip_gen: v7x
topology: tpu7x:2x2x1
jax: 0.10.0
libtpu: 0.0.40
codegen_flags: <defaults>
</compile_context>

<pallas_src>
import math

import jax
import jax.numpy as jnp
from jax.experimental import pallas as pl
from jax.experimental.pallas import tpu as pltpu


def _sigmoid(a):
    # Exactly sigmoid(a); one tanh EUP push instead of exp + reciprocal.
    return 0.5 * jnp.tanh(0.5 * a) + 0.5


def _gru2_kernel(gx1_ref, whh1_ref, bhh1n_ref,
                 wih2_ref, whh2_ref, b2_ref, bhh2n_ref, out_ref):
    """Fused 2-layer GRU recurrence.

    gx1_ref : (T, B, 3*H1) f32   precomputed x@Wih1 with bih1 (+ bhh1 for r,z) folded in
    whh1_ref: (H1, 3*H1)  bf16
    bhh1n_ref: (1, H1)    f32    recurrent bias of layer-1 n gate
    wih2_ref: (H1, 3*H2)  bf16
    whh2_ref: (H2, 3*H2)  bf16
    b2_ref  : (1, 3*H2)   f32    bih2 (+ bhh2 for r,z)
    bhh2n_ref: (1, H2)    f32    recurrent bias of layer-2 n gate
    out_ref : (B, H2)     f32    h_n[-1] of the second GRU
    """
    T, B, _ = gx1_ref.shape
    H1 = whh1_ref.shape[0]
    H2 = whh2_ref.shape[0]

    # Hoist every weight / bias read (and broadcast) out of the unrolled loop.
    whh1 = whh1_ref[...]
    wih2 = wih2_ref[...]
    whh2 = whh2_ref[...]
    bhh1n = jnp.broadcast_to(bhh1n_ref[...], (B, H1))
    b2 = jnp.broadcast_to(b2_ref[...], (B, 3 * H2))
    bhh2n = jnp.broadcast_to(bhh2n_ref[...], (B, H2))

    h1 = jnp.zeros((B, H1), jnp.float32)
    h2 = jnp.zeros((B, H2), jnp.float32)

    # Small static trip count -> unrolled; the recurrence is inherently serial.
    for t in range(T):
        # ---- layer 1: only the recurrent matmul is on the serial path ----
        gh1 = jnp.dot(h1.astype(jnp.bfloat16), whh1,
                      preferred_element_type=jnp.float32)        # (B, 3H1)
        gx1 = gx1_ref[t]                                         # (B, 3H1)
        rz1 = _sigmoid(gx1[:, :2 * H1] + gh1[:, :2 * H1])        # r,z in one EUP slab
        r1 = rz1[:, :H1]
        z1 = rz1[:, H1:]
        n1 = jnp.tanh(gx1[:, 2 * H1:] + r1 * (gh1[:, 2 * H1:] + bhh1n))
        h1 = (1.0 - z1) * n1 + z1 * h1

        # ---- layer 2: consumes h1_t immediately (never written to HBM) ----
        h1b = h1.astype(jnp.bfloat16)
        gx2 = jnp.dot(h1b, wih2, preferred_element_type=jnp.float32) + b2
        gh2 = jnp.dot(h2.astype(jnp.bfloat16), whh2,
                      preferred_element_type=jnp.float32)        # (B, 3H2)
        rz2 = _sigmoid(gx2[:, :2 * H2] + gh2[:, :2 * H2])
        r2 = rz2[:, :H2]
        z2 = rz2[:, H2:]
        n2 = jnp.tanh(gx2[:, 2 * H2:] + r2 * (gh2[:, 2 * H2:] + bhh2n))
        h2 = (1.0 - z2) * n2 + z2 * h2

    out_ref[...] = h2


def asl_gru_forward(x, params):
    """x: (B, T, input_dim) (batch_first=True). Returns (B, output_dim) f32."""
    wih1, whh1, bih1, bhh1, wih2, whh2, bih2, bhh2 = params
    x = x.astype(jnp.float32)                      # matches x = x.float()
    B, T, In = x.shape
    H1 = whh1.shape[0]
    H2 = whh2.shape[0]

    bf = lambda a: a.astype(jnp.bfloat16)

    # Hoist the layer-1 input projection out of the recurrence: one
    # (B*T, In) x (In, 3H1) MXU matmul instead of T tiny ones on the serial
    # path.  Fold bih1 plus the r/z part of bhh1 into it (n's recurrent bias
    # must stay inside r*(Whh_n h + bhh_n)).
    b1_fold = bih1 + jnp.concatenate(
        [bhh1[:2 * H1], jnp.zeros((H1,), jnp.float32)])
    gx1 = jnp.dot(bf(x.reshape(B * T, In)), bf(wih1),
                  preferred_element_type=jnp.float32) + b1_fold
    gx1 = jnp.transpose(gx1.reshape(B, T, 3 * H1), (1, 0, 2))   # (T, B, 3H1)

    b2_fold = (bih2 + jnp.concatenate(
        [bhh2[:2 * H2], jnp.zeros((H2,), jnp.float32)]))[None, :]
    bhh1n = bhh1[2 * H1:][None, :]
    bhh2n = bhh2[2 * H2:][None, :]

    # Everything (sequence projection, weights, states) fits easily in VMEM on
    # v5e/v6e/v7x, so a single grid-less invocation keeps weights resident and
    # avoids per-grid-step overhead.  See scaling notes in the header.
    vmem = pl.BlockSpec(memory_space=pltpu.MemorySpace.VMEM)
    return pl.pallas_call(
        _gru2_kernel,
        out_shape=jax.ShapeDtypeStruct((B, H2), jnp.float32),
        in_specs=[vmem] * 7,
        out_specs=vmem,
    )(gx1, bf(whh1), bhh1n, bf(wih2), bf(whh2), b2_fold, bhh2n)


def init_gru_params(key, input_dim, hidden_dim, output_dim):
    """torch.nn.GRU-style init: U(-1/sqrt(H), 1/sqrt(H)) per layer.
    Fused-gate layout: weights (in_features, 3*out_features), biases (3*out,)
    with gates ordered [r | z | n] along the last axis."""
    ks = jax.random.split(key, 8)
    b1 = 1.0 / math.sqrt(hidden_dim)
    b2 = 1.0 / math.sqrt(output_dim)
    u = lambda k, shape, b: jax.random.uniform(k, shape, jnp.float32, -b, b)
    wih1 = u(ks[0], (input_dim, 3 * hidden_dim), b1)
    whh1 = u(ks[1], (hidden_dim, 3 * hidden_dim), b1)
    bih1 = u(ks[2], (3 * hidden_dim,), b1)
    bhh1 = u(ks[3], (3 * hidden_dim,), b1)
    wih2 = u(ks[4], (hidden_dim, 3 * output_dim), b2)
    whh2 = u(ks[5], (output_dim, 3 * output_dim), b2)
    bih2 = u(ks[6], (3 * output_dim,), b2)
    bhh2 = u(ks[7], (3 * output_dim,), b2)
    return wih1, whh1, bih1, bhh1, wih2, whh2, bih2, bhh2


def reference_forward(x, params):
    """Pure-JAX float32 reference of the same two stacked GRU layers."""
    wih1, whh1, bih1, bhh1, wih2, whh2, bih2, bhh2 = params
    x = x.astype(jnp.float32)
    B, T, _ = x.shape

    def cell(x_t, h, wih, whh, bih, bhh):
        H = whh.shape[0]
        gx = x_t @ wih + bih
        gh = h @ whh + bhh
        r = jax.nn.sigmoid(gx[:, :H] + gh[:, :H])
        z = jax.nn.sigmoid(gx[:, H:2 * H] + gh[:, H:2 * H])
        n = jnp.tanh(gx[:, 2 * H:] + r * gh[:, 2 * H:])
        return (1.0 - z) * n + z * h

    h1 = jnp.zeros((B, whh1.shape[0]), jnp.float32)
    h2 = jnp.zeros((B, whh2.shape[0]), jnp.float32)
    for t in range(T):
        h1 = cell(x[:, t], h1, wih1, whh1, bih1, bhh1)
        h2 = cell(h1, h2, wih2, whh2, bih2, bhh2)
    return h2


if __name__ == "__main__":
    key = jax.random.PRNGKey(0)
    kx, kp = jax.random.split(key)

    # batch=2, seq=8, input_dim=64 (flattened keypoints), hidden=32, out=16
    B, T = 2, 8
    input_dim, hidden_dim, num_layers, output_dim = 64, 32, 2, 16

    x = jax.random.normal(kx, (B, T, input_dim), jnp.float32)
    params = init_gru_params(kp, input_dim, hidden_dim, output_dim)

    fwd = jax.jit(asl_gru_forward)
    out = jax.block_until_ready(fwd(x, params))

    ref = reference_forward(x, params)
    assert out.shape == (B, output_dim)
    # bf16 matmul operands (f32 accumulation) vs f32 reference -> loose tolerance.
    assert jnp.allclose(out, ref, atol=5e-2, rtol=5e-2), (
        f"mismatch vs reference: max abs diff = {jnp.max(jnp.abs(out - ref))}")

    print("KERNEL_OK")
</pallas_src>

<mosaic_0001>
module attributes {stable_mosaic.version = 11 : i64} {
  func.func @_gru2_kernel(%arg0: memref<8x2x96xf32, #tpu.memory_space<vmem>>, %arg1: memref<32x96xbf16, #tpu.memory_space<vmem>>, %arg2: memref<1x32xf32, #tpu.memory_space<vmem>>, %arg3: memref<32x48xbf16, #tpu.memory_space<vmem>>, %arg4: memref<16x48xbf16, #tpu.memory_space<vmem>>, %arg5: memref<1x48xf32, #tpu.memory_space<vmem>>, %arg6: memref<1x16xf32, #tpu.memory_space<vmem>>, %arg7: memref<2x16xf32, #tpu.memory_space<vmem>>) attributes {dimension_semantics = [], scalar_prefetch = 0 : i64, scratch_operands = 0 : i64, tpu.core_type = #tpu.core_type<tc>} {
    %c0 = arith.constant 0 : index
    %c0_0 = arith.constant 0 : index
    %0 = vector.load %arg1[%c0, %c0_0] : memref<32x96xbf16, #tpu.memory_space<vmem>>, vector<32x96xbf16>
    %c0_1 = arith.constant 0 : index
    %c0_2 = arith.constant 0 : index
    %1 = vector.load %arg3[%c0_1, %c0_2] : memref<32x48xbf16, #tpu.memory_space<vmem>>, vector<32x48xbf16>
    %c0_3 = arith.constant 0 : index
    %c0_4 = arith.constant 0 : index
    %2 = vector.load %arg4[%c0_3, %c0_4] : memref<16x48xbf16, #tpu.memory_space<vmem>>, vector<16x48xbf16>
    %c0_5 = arith.constant 0 : index
    %c0_6 = arith.constant 0 : index
    %3 = vector.load %arg2[%c0_5, %c0_6] : memref<1x32xf32, #tpu.memory_space<vmem>>, vector<1x32xf32>
    %4 = vector.shape_cast %3 : vector<1x32xf32> to vector<1x32xf32>
    %5 = vector.broadcast %4 : vector<1x32xf32> to vector<2x32xf32>
    %c0_7 = arith.constant 0 : index
    %c0_8 = arith.constant 0 : index
    %6 = vector.load %arg5[%c0_7, %c0_8] : memref<1x48xf32, #tpu.memory_space<vmem>>, vector<1x48xf32>
    %7 = vector.shape_cast %6 : vector<1x48xf32> to vector<1x48xf32>
    %8 = vector.broadcast %7 : vector<1x48xf32> to vector<2x48xf32>
    %c0_9 = arith.constant 0 : index
    %c0_10 = arith.constant 0 : index
    %9 = vector.load %arg6[%c0_9, %c0_10] : memref<1x16xf32, #tpu.memory_space<vmem>>, vector<1x16xf32>
    %10 = vector.shape_cast %9 : vector<1x16xf32> to vector<1x16xf32>
    %11 = vector.broadcast %10 : vector<1x16xf32> to vector<2x16xf32>
    %cst = arith.constant 0.000000e+00 : f32
    %12 = vector.broadcast %cst : f32 to vector<2x32xf32>
    %cst_11 = arith.constant 0.000000e+00 : f32
    %13 = vector.broadcast %cst_11 : f32 to vector<2x16xf32>
    %14 = arith.truncf %12 : vector<2x32xf32> to vector<2x32xbf16>
    %cst_12 = arith.constant dense<0.000000e+00> : vector<2x96xf32>
    %15 = tpu.matmul %14, %0, %cst_12 {dimension_numbers = #tpu.dot_dimension_numbers<[1], [0], [0], [1], [0, 0, 1, 1], [], []>} : vector<2x32xbf16>, vector<32x96xbf16>, vector<2x96xf32> -> vector<2x96xf32>
    %c0_13 = arith.constant 0 : index
    %c0_14 = arith.constant 0 : index
    %c0_15 = arith.constant 0 : index
    %16 = vector.load %arg0[%c0_13, %c0_14, %c0_15] : memref<8x2x96xf32, #tpu.memory_space<vmem>>, vector<1x2x96xf32>
    %17 = vector.shape_cast %16 : vector<1x2x96xf32> to vector<2x96xf32>
    %18 = vector.extract_strided_slice %17 {offsets = [0, 0], sizes = [2, 64], strides = [1, 1]} : vector<2x96xf32> to vector<2x64xf32>
    %19 = vector.extract_strided_slice %15 {offsets = [0, 0], sizes = [2, 64], strides = [1, 1]} : vector<2x96xf32> to vector<2x64xf32>
    %20 = arith.addf %18, %19 : vector<2x64xf32>
    %cst_16 = arith.constant 5.000000e-01 : f32
    %21 = vector.broadcast %cst_16 : f32 to vector<2x64xf32>
    %22 = arith.mulf %21, %20 : vector<2x64xf32>
    %23 = math.tanh %22 : vector<2x64xf32>
    %cst_17 = arith.constant 5.000000e-01 : f32
    %24 = vector.broadcast %cst_17 : f32 to vector<2x64xf32>
    %25 = arith.mulf %24, %23 : vector<2x64xf32>
    %cst_18 = arith.constant 5.000000e-01 : f32
    %26 = vector.broadcast %cst_18 : f32 to vector<2x64xf32>
    %27 = arith.addf %25, %26 : vector<2x64xf32>
    %28 = vector.extract_strided_slice %27 {offsets = [0, 0], sizes = [2, 32], strides = [1, 1]} : vector<2x64xf32> to vector<2x32xf32>
    %29 = vector.extract_strided_slice %27 {offsets = [0, 32], sizes = [2, 32], strides = [1, 1]} : vector<2x64xf32> to vector<2x32xf32>
    %30 = vector.extract_strided_slice %17 {offsets = [0, 64], sizes = [2, 32], strides = [1, 1]} : vector<2x96xf32> to vector<2x32xf32>
    %31 = vector.extract_strided_slice %15 {offsets = [0, 64], sizes = [2, 32], strides = [1, 1]} : vector<2x96xf32> to vector<2x32xf32>
    %32 = arith.addf %31, %5 : vector<2x32xf32>
    %33 = arith.mulf %28, %32 : vector<2x32xf32>
    %34 = arith.addf %30, %33 : vector<2x32xf32>
    %35 = math.tanh %34 : vector<2x32xf32>
    %cst_19 = arith.constant 1.000000e+00 : f32
    %36 = vector.broadcast %cst_19 : f32 to vector<2x32xf32>
    %37 = arith.subf %36, %29 : vector<2x32xf32>
    %38 = arith.mulf %37, %35 : vector<2x32xf32>
    %39 = arith.mulf %29, %12 : vector<2x32xf32>
    %40 = arith.addf %38, %39 : vector<2x32xf32>
    %41 = arith.truncf %40 : vector<2x32xf32> to vector<2x32xbf16>
    %cst_20 = arith.constant dense<0.000000e+00> : vector<2x48xf32>
    %42 = tpu.matmul %41, %1, %cst_20 {dimension_numbers = #tpu.dot_dimension_numbers<[1], [0], [0], [1], [0, 0, 1, 1], [], []>} : vector<2x32xbf16>, vector<32x48xbf16>, vector<2x48xf32> -> vector<2x48xf32>
    %43 = arith.addf %42, %8 : vector<2x48xf32>
    %44 = arith.truncf %13 : vector<2x16xf32> to vector<2x16xbf16>
    %cst_21 = arith.constant dense<0.000000e+00> : vector<2x48xf32>
    %45 = tpu.matmul %44, %2, %cst_21 {dimension_numbers = #tpu.dot_dimension_numbers<[1], [0], [0], [1], [0, 0, 1, 1], [], []>} : vector<2x16xbf16>, vector<16x48xbf16>, vector<2x48xf32> -> vector<2x48xf32>
    %46 = vector.extract_strided_slice %43 {offsets = [0, 0], sizes = [2, 32], strides = [1, 1]} : vector<2x48xf32> to vector<2x32xf32>
    %47 = vector.extract_strided_slice %45 {offsets = [0, 0], sizes = [2, 32], strides = [1, 1]} : vector<2x48xf32> to vector<2x32xf32>
    %48 = arith.addf %46, %47 : vector<2x32xf32>
    %cst_22 = arith.constant 5.000000e-01 : f32
    %49 = vector.broadcast %cst_22 : f32 to vector<2x32xf32>
    %50 = arith.mulf %49, %48 : vector<2x32xf32>
    %51 = math.tanh %50 : vector<2x32xf32>
    %cst_23 = arith.constant 5.000000e-01 : f32
    %52 = vector.broadcast %cst_23 : f32 to vector<2x32xf32>
    %53 = arith.mulf %52, %51 : vector<2x32xf32>
    %cst_24 = arith.constant 5.000000e-01 : f32
    %54 = vector.broadcast %cst_24 : f32 to vector<2x32xf32>
    %55 = arith.addf %53, %54 : vector<2x32xf32>
    %56 = vector.extract_strided_slice %55 {offsets = [0, 0], sizes = [2, 16], strides = [1, 1]} : vector<2x32xf32> to vector<2x16xf32>
    %57 = vector.extract_strided_slice %55 {offsets = [0, 16], sizes = [2, 16], strides = [1, 1]} : vector<2x32xf32> to vector<2x16xf32>
    %58 = vector.extract_strided_slice %43 {offsets = [0, 32], sizes = [2, 16], strides = [1, 1]} : vector<2x48xf32> to vector<2x16xf32>
    %59 = vector.extract_strided_slice %45 {offsets = [0, 32], sizes = [2, 16], strides = [1, 1]} : vector<2x48xf32> to vector<2x16xf32>
    %60 = arith.addf %59, %11 : vector<2x16xf32>
    %61 = arith.mulf %56, %60 : vector<2x16xf32>
    %62 = arith.addf %58, %61 : vector<2x16xf32>
    %63 = math.tanh %62 : vector<2x16xf32>
    %cst_25 = arith.constant 1.000000e+00 : f32
    %64 = vector.broadcast %cst_25 : f32 to vector<2x16xf32>
    %65 = arith.subf %64, %57 : vector<2x16xf32>
    %66 = arith.mulf %65, %63 : vector<2x16xf32>
    %67 = arith.mulf %57, %13 : vector<2x16xf32>
    %68 = arith.addf %66, %67 : vector<2x16xf32>
    %69 = arith.truncf %40 : vector<2x32xf32> to vector<2x32xbf16>
    %cst_26 = arith.constant dense<0.000000e+00> : vector<2x96xf32>
    %70 = tpu.matmul %69, %0, %cst_26 {dimension_numbers = #tpu.dot_dimension_numbers<[1], [0], [0], [1], [0, 0, 1, 1], [], []>} : vector<2x32xbf16>, vector<32x96xbf16>, vector<2x96xf32> -> vector<2x96xf32>
    %c1 = arith.constant 1 : index
    %c0_27 = arith.constant 0 : index
    %c0_28 = arith.constant 0 : index
    %71 = vector.load %arg0[%c1, %c0_27, %c0_28] : memref<8x2x96xf32, #tpu.memory_space<vmem>>, vector<1x2x96xf32>
    %72 = vector.shape_cast %71 : vector<1x2x96xf32> to vector<2x96xf32>
    %73 = vector.extract_strided_slice %72 {offsets = [0, 0], sizes = [2, 64], strides = [1, 1]} : vector<2x96xf32> to vector<2x64xf32>
    %74 = vector.extract_strided_slice %70 {offsets = [0, 0], sizes = [2, 64], strides = [1, 1]} : vector<2x96xf32> to vector<2x64xf32>
    %75 = arith.addf %73, %74 : vector<2x64xf32>
    %cst_29 = arith.constant 5.000000e-01 : f32
    %76 = vector.broadcast %cst_29 : f32 to vector<2x64xf32>
    %77 = arith.mulf %76, %75 : vector<2x64xf32>
    %78 = math.tanh %77 : vector<2x64xf32>
    %cst_30 = arith.constant 5.000000e-01 : f32
    %79 = vector.broadcast %cst_30 : f32 to vector<2x64xf32>
    %80 = arith.mulf %79, %78 : vector<2x64xf32>
    %cst_31 = arith.constant 5.000000e-01 : f32
    %81 = vector.broadcast %cst_31 : f32 to vector<2x64xf32>
    %82 = arith.addf %80, %81 : vector<2x64xf32>
    %83 = vector.extract_strided_slice %82 {offsets = [0, 0], sizes = [2, 32], strides = [1, 1]} : vector<2x64xf32> to vector<2x32xf32>
    %84 = vector.extract_strided_slice %82 {offsets = [0, 32], sizes = [2, 32], strides = [1, 1]} : vector<2x64xf32> to vector<2x32xf32>
    %85 = vector.extract_strided_slice %72 {offsets = [0, 64], sizes = [2, 32], strides = [1, 1]} : vector<2x96xf32> to vector<2x32xf32>
    %86 = vector.extract_strided_slice %70 {offsets = [0, 64], sizes = [2, 32], strides = [1, 1]} : vector<2x96xf32> to vector<2x32xf32>
    %87 = arith.addf %86, %5 : vector<2x32xf32>
    %88 = arith.mulf %83, %87 : vector<2x32xf32>
    %89 = arith.addf %85, %88 : vector<2x32xf32>
    %90 = math.tanh %89 : vector<2x32xf32>
    %cst_32 = arith.constant 1.000000e+00 : f32
    %91 = vector.broadcast %cst_32 : f32 to vector<2x32xf32>
    %92 = arith.subf %91, %84 : vector<2x32xf32>
    %93 = arith.mulf %92, %90 : vector<2x32xf32>
    %94 = arith.mulf %84, %40 : vector<2x32xf32>
    %95 = arith.addf %93, %94 : vector<2x32xf32>
    %96 = arith.truncf %95 : vector<2x32xf32> to vector<2x32xbf16>
    %cst_33 = arith.constant dense<0.000000e+00> : vector<2x48xf32>
    %97 = tpu.matmul %96, %1, %cst_33 {dimension_numbers = #tpu.dot_dimension_numbers<[1], [0], [0], [1], [0, 0, 1, 1], [], []>} : vector<2x32xbf16>, vector<32x48xbf16>, vector<2x48xf32> -> vector<2x48xf32>
    %98 = arith.addf %97, %8 : vector<2x48xf32>
    %99 = arith.truncf %68 : vector<2x16xf32> to vector<2x16xbf16>
    %cst_34 = arith.constant dense<0.000000e+00> : vector<2x48xf32>
    %100 = tpu.matmul %99, %2, %cst_34 {dimension_numbers = #tpu.dot_dimension_numbers<[1], [0], [0], [1], [0, 0, 1, 1], [], []>} : vector<2x16xbf16>, vector<16x48xbf16>, vector<2x48xf32> -> vector<2x48xf32>
    %101 = vector.extract_strided_slice %98 {offsets = [0, 0], sizes = [2, 32], strides = [1, 1]} : vector<2x48xf32> to vector<2x32xf32>
    %102 = vector.extract_strided_slice %100 {offsets = [0, 0], sizes = [2, 32], strides = [1, 1]} : vector<2x48xf32> to vector<2x32xf32>
    %103 = arith.addf %101, %102 : vector<2x32xf32>
    %cst_35 = arith.constant 5.000000e-01 : f32
    %104 = vector.broadcast %cst_35 : f32 to vector<2x32xf32>
    %105 = arith.mulf %104, %103 : vector<2x32xf32>
    %106 = math.tanh %105 : vector<2x32xf32>
    %cst_36 = arith.constant 5.000000e-01 : f32
    %107 = vector.broadcast %cst_36 : f32 to vector<2x32xf32>
    %108 = arith.mulf %107, %106 : vector<2x32xf32>
    %cst_37 = arith.constant 5.000000e-01 : f32
    %109 = vector.broadcast %cst_37 : f32 to vector<2x32xf32>
    %110 = arith.addf %108, %109 : vector<2x32xf32>
    %111 = vector.extract_strided_slice %110 {offsets = [0, 0], sizes = [2, 16], strides = [1, 1]} : vector<2x32xf32> to vector<2x16xf32>
    %112 = vector.extract_strided_slice %110 {offsets = [0, 16], sizes = [2, 16], strides = [1, 1]} : vector<2x32xf32> to vector<2x16xf32>
    %113 = vector.extract_strided_slice %98 {offsets = [0, 32], sizes = [2, 16], strides = [1, 1]} : vector<2x48xf32> to vector<2x16xf32>
    %114 = vector.extract_strided_slice %100 {offsets = [0, 32], sizes = [2, 16], strides = [1, 1]} : vector<2x48xf32> to vector<2x16xf32>
    %115 = arith.addf %114, %11 : vector<2x16xf32>
    %116 = arith.mulf %111, %115 : vector<2x16xf32>
    %117 = arith.addf %113, %116 : vector<2x16xf32>
    %118 = math.tanh %117 : vector<2x16xf32>
    %cst_38 = arith.constant 1.000000e+00 : f32
    %119 = vector.broadcast %cst_38 : f32 to vector<2x16xf32>
    %120 = arith.subf %119, %112 : vector<2x16xf32>
    %121 = arith.mulf %120, %118 : vector<2x16xf32>
    %122 = arith.mulf %112, %68 : vector<2x16xf32>
    %123 = arith.addf %121, %122 : vector<2x16xf32>
    %124 = arith.truncf %95 : vector<2x32xf32> to vector<2x32xbf16>
    %cst_39 = arith.constant dense<0.000000e+00> : vector<2x96xf32>
    %125 = tpu.matmul %124, %0, %cst_39 {dimension_numbers = #tpu.dot_dimension_numbers<[1], [0], [0], [1], [0, 0, 1, 1], [], []>} : vector<2x32xbf16>, vector<32x96xbf16>, vector<2x96xf32> -> vector<2x96xf32>
    %c2 = arith.constant 2 : index
    %c0_40 = arith.constant 0 : index
    %c0_41 = arith.constant 0 : index
    %126 = vector.load %arg0[%c2, %c0_40, %c0_41] : memref<8x2x96xf32, #tpu.memory_space<vmem>>, vector<1x2x96xf32>
    %127 = vector.shape_cast %126 : vector<1x2x96xf32> to vector<2x96xf32>
    %128 = vector.extract_strided_slice %127 {offsets = [0, 0], sizes = [2, 64], strides = [1, 1]} : vector<2x96xf32> to vector<2x64xf32>
    %129 = vector.extract_strided_slice %125 {offsets = [0, 0], sizes = [2, 64], strides = [1, 1]} : vector<2x96xf32> to vector<2x64xf32>
    %130 = arith.addf %128, %129 : vector<2x64xf32>
    %cst_42 = arith.constant 5.000000e-01 : f32
    %131 = vector.broadcast %cst_42 : f32 to vector<2x64xf32>
    %132 = arith.mulf %131, %130 : vector<2x64xf32>
    %133 = math.tanh %132 : vector<2x64xf32>
    %cst_43 = arith.constant 5.000000e-01 : f32
    %134 = vector.broadcast %cst_43 : f32 to vector<2x64xf32>
    %135 = arith.mulf %134, %133 : vector<2x64xf32>
    %cst_44 = arith.constant 5.000000e-01 : f32
    %136 = vector.broadcast %cst_44 : f32 to vector<2x64xf32>
    %137 = arith.addf %135, %136 : vector<2x64xf32>
    %138 = vector.extract_strided_slice %137 {offsets = [0, 0], sizes = [2, 32], strides = [1, 1]} : vector<2x64xf32> to vector<2x32xf32>
    %139 = vector.extract_strided_slice %137 {offsets = [0, 32], sizes = [2, 32], strides = [1, 1]} : vector<2x64xf32> to vector<2x32xf32>
    %140 = vector.extract_strided_slice %127 {offsets = [0, 64], sizes = [2, 32], strides = [1, 1]} : vector<2x96xf32> to vector<2x32xf32>
    %141 = vector.extract_strided_slice %125 {offsets = [0, 64], sizes = [2, 32], strides = [1, 1]} : vector<2x96xf32> to vector<2x32xf32>
    %142 = arith.addf %141, %5 : vector<2x32xf32>
    %143 = arith.mulf %138, %142 : vector<2x32xf32>
    %144 = arith.addf %140, %143 : vector<2x32xf32>
    %145 = math.tanh %144 : vector<2x32xf32>
    %cst_45 = arith.constant 1.000000e+00 : f32
    %146 = vector.broadcast %cst_45 : f32 to vector<2x32xf32>
    %147 = arith.subf %146, %139 : vector<2x32xf32>
    %148 = arith.mulf %147, %145 : vector<2x32xf32>
    %149 = arith.mulf %139, %95 : vector<2x32xf32>
    %150 = arith.addf %148, %149 : vector<2x32xf32>
    %151 = arith.truncf %150 : vector<2x32xf32> to vector<2x32xbf16>
    %cst_46 = arith.constant dense<0.000000e+00> : vector<2x48xf32>
    %152 = tpu.matmul %151, %1, %cst_46 {dimension_numbers = #tpu.dot_dimension_numbers<[1], [0], [0], [1], [0, 0, 1, 1], [], []>} : vector<2x32xbf16>, vector<32x48xbf16>, vector<2x48xf32> -> vector<2x48xf32>
    %153 = arith.addf %152, %8 : vector<2x48xf32>
    %154 = arith.truncf %123 : vector<2x16xf32> to vector<2x16xbf16>
    %cst_47 = arith.constant dense<0.000000e+00> : vector<2x48xf32>
    %155 = tpu.matmul %154, %2, %cst_47 {dimension_numbers = #tpu.dot_dimension_numbers<[1], [0], [0], [1], [0, 0, 1, 1], [], []>} : vector<2x16xbf16>, vector<16x48xbf16>, vector<2x48xf32> -> vector<2x48xf32>
    %156 = vector.extract_strided_slice %153 {offsets = [0, 0], sizes = [2, 32], strides = [1, 1]} : vector<2x48xf32> to vector<2x32xf32>
    %157 = vector.extract_strided_slice %155 {offsets = [0, 0], sizes = [2, 32], strides = [1, 1]} : vector<2x48xf32> to vector<2x32xf32>
    %158 = arith.addf %156, %157 : vector<2x32xf32>
    %cst_48 = arith.constant 5.000000e-01 : f32
    %159 = vector.broadcast %cst_48 : f32 to vector<2x32xf32>
    %160 = arith.mulf %159, %158 : vector<2x32xf32>
    %161 = math.tanh %160 : vector<2x32xf32>
    %cst_49 = arith.constant 5.000000e-01 : f32
    %162 = vector.broadcast %cst_49 : f32 to vector<2x32xf32>
    %163 = arith.mulf %162, %161 : vector<2x32xf32>
    %cst_50 = arith.constant 5.000000e-01 : f32
    %164 = vector.broadcast %cst_50 : f32 to vector<2x32xf32>
    %165 = arith.addf %163, %164 : vector<2x32xf32>
    %166 = vector.extract_strided_slice %165 {offsets = [0, 0], sizes = [2, 16], strides = [1, 1]} : vector<2x32xf32> to vector<2x16xf32>
    %167 = vector.extract_strided_slice %165 {offsets = [0, 16], sizes = [2, 16], strides = [1, 1]} : vector<2x32xf32> to vector<2x16xf32>
    %168 = vector.extract_strided_slice %153 {offsets = [0, 32], sizes = [2, 16], strides = [1, 1]} : vector<2x48xf32> to vector<2x16xf32>
    %169 = vector.extract_strided_slice %155 {offsets = [0, 32], sizes = [2, 16], strides = [1, 1]} : vector<2x48xf32> to vector<2x16xf32>
    %170 = arith.addf %169, %11 : vector<2x16xf32>
    %171 = arith.mulf %166, %170 : vector<2x16xf32>
    %172 = arith.addf %168, %171 : vector<2x16xf32>
    %173 = math.tanh %172 : vector<2x16xf32>
    %cst_51 = arith.constant 1.000000e+00 : f32
    %174 = vector.broadcast %cst_51 : f32 to vector<2x16xf32>
    %175 = arith.subf %174, %167 : vector<2x16xf32>
    %176 = arith.mulf %175, %173 : vector<2x16xf32>
    %177 = arith.mulf %167, %123 : vector<2x16xf32>
    %178 = arith.addf %176, %177 : vector<2x16xf32>
    %179 = arith.truncf %150 : vector<2x32xf32> to vector<2x32xbf16>
    %cst_52 = arith.constant dense<0.000000e+00> : vector<2x96xf32>
    %180 = tpu.matmul %179, %0, %cst_52 {dimension_numbers = #tpu.dot_dimension_numbers<[1], [0], [0], [1], [0, 0, 1, 1], [], []>} : vector<2x32xbf16>, vector<32x96xbf16>, vector<2x96xf32> -> vector<2x96xf32>
    %c3 = arith.constant 3 : index
    %c0_53 = arith.constant 0 : index
    %c0_54 = arith.constant 0 : index
    %181 = vector.load %arg0[%c3, %c0_53, %c0_54] : memref<8x2x96xf32, #tpu.memory_space<vmem>>, vector<1x2x96xf32>
    %182 = vector.shape_cast %181 : vector<1x2x96xf32> to vector<2x96xf32>
    %183 = vector.extract_strided_slice %182 {offsets = [0, 0], sizes = [2, 64], strides = [1, 1]} : vector<2x96xf32> to vector<2x64xf32>
    %184 = vector.extract_strided_slice %180 {offsets = [0, 0], sizes = [2, 64], strides = [1, 1]} : vector<2x96xf32> to vector<2x64xf32>
    %185 = arith.addf %183, %184 : vector<2x64xf32>
    %cst_55 = arith.constant 5.000000e-01 : f32
    %186 = vector.broadcast %cst_55 : f32 to vector<2x64xf32>
    %187 = arith.mulf %186, %185 : vector<2x64xf32>
    %188 = math.tanh %187 : vector<2x64xf32>
    %cst_56 = arith.constant 5.000000e-01 : f32
    %189 = vector.broadcast %cst_56 : f32 to vector<2x64xf32>
    %190 = arith.mulf %189, %188 : vector<2x64xf32>
    %cst_57 = arith.constant 5.000000e-01 : f32
    %191 = vector.broadcast %cst_57 : f32 to vector<2x64xf32>
    %192 = arith.addf %190, %191 : vector<2x64xf32>
    %193 = vector.extract_strided_slice %192 {offsets = [0, 0], sizes = [2, 32], strides = [1, 1]} : vector<2x64xf32> to vector<2x32xf32>
    %194 = vector.extract_strided_slice %192 {offsets = [0, 32], sizes = [2, 32], strides = [1, 1]} : vector<2x64xf32> to vector<2x32xf32>
    %195 = vector.extract_strided_slice %182 {offsets = [0, 64], sizes = [2, 32], strides = [1, 1]} : vector<2x96xf32> to vector<2x32xf32>
    %196 = vector.extract_strided_slice %180 {offsets = [0, 64], sizes = [2, 32], strides = [1, 1]} : vector<2x96xf32> to vector<2x32xf32>
    %197 = arith.addf %196, %5 : vector<2x32xf32>
    %198 = arith.mulf %193, %197 : vector<2x32xf32>
    %199 = arith.addf %195, %198 : vector<2x32xf32>
    %200 = math.tanh %199 : vector<2x32xf32>
    %cst_58 = arith.constant 1.000000e+00 : f32
    %201 = vector.broadcast %cst_58 : f32 to vector<2x32xf32>
    %202 = arith.subf %201, %194 : vector<2x32xf32>
    %203 = arith.mulf %202, %200 : vector<2x32xf32>
    %204 = arith.mulf %194, %150 : vector<2x32xf32>
    %205 = arith.addf %203, %204 : vector<2x32xf32>
    %206 = arith.truncf %205 : vector<2x32xf32> to vector<2x32xbf16>
    %cst_59 = arith.constant dense<0.000000e+00> : vector<2x48xf32>
    %207 = tpu.matmul %206, %1, %cst_59 {dimension_numbers = #tpu.dot_dimension_numbers<[1], [0], [0], [1], [0, 0, 1, 1], [], []>} : vector<2x32xbf16>, vector<32x48xbf16>, vector<2x48xf32> -> vector<2x48xf32>
    %208 = arith.addf %207, %8 : vector<2x48xf32>
    %209 = arith.truncf %178 : vector<2x16xf32> to vector<2x16xbf16>
    %cst_60 = arith.constant dense<0.000000e+00> : vector<2x48xf32>
    %210 = tpu.matmul %209, %2, %cst_60 {dimension_numbers = #tpu.dot_dimension_numbers<[1], [0], [0], [1], [0, 0, 1, 1], [], []>} : vector<2x16xbf16>, vector<16x48xbf16>, vector<2x48xf32> -> vector<2x48xf32>
    %211 = vector.extract_strided_slice %208 {offsets = [0, 0], sizes = [2, 32], strides = [1, 1]} : vector<2x48xf32> to vector<2x32xf32>
    %212 = vector.extract_strided_slice %210 {offsets = [0, 0], sizes = [2, 32], strides = [1, 1]} : vector<2x48xf32> to vector<2x32xf32>
    %213 = arith.addf %211, %212 : vector<2x32xf32>
    %cst_61 = arith.constant 5.000000e-01 : f32
    %214 = vector.broadcast %cst_61 : f32 to vector<2x32xf32>
    %215 = arith.mulf %214, %213 : vector<2x32xf32>
    %216 = math.tanh %215 : vector<2x32xf32>
    %cst_62 = arith.constant 5.000000e-01 : f32
    %217 = vector.broadcast %cst_62 : f32 to vector<2x32xf32>
    %218 = arith.mulf %217, %216 : vector<2x32xf32>
    %cst_63 = arith.constant 5.000000e-01 : f32
    %219 = vector.broadcast %cst_63 : f32 to vector<2x32xf32>
    %220 = arith.addf %218, %219 : vector<2x32xf32>
    %221 = vector.extract_strided_slice %220 {offsets = [0, 0], sizes = [2, 16], strides = [1, 1]} : vector<2x32xf32> to vector<2x16xf32>
    %222 = vector.extract_strided_slice %220 {offsets = [0, 16], sizes = [2, 16], strides = [1, 1]} : vector<2x32xf32> to vector<2x16xf32>
    %223 = vector.extract_strided_slice %208 {offsets = [0, 32], sizes = [2, 16], strides = [1, 1]} : vector<2x48xf32> to vector<2x16xf32>
    %224 = vector.extract_strided_slice %210 {offsets = [0, 32], sizes = [2, 16], strides = [1, 1]} : vector<2x48xf32> to vector<2x16xf32>
    %225 = arith.addf %224, %11 : vector<2x16xf32>
    %226 = arith.mulf %221, %225 : vector<2x16xf32>
    %227 = arith.addf %223, %226 : vector<2x16xf32>
    %228 = math.tanh %227 : vector<2x16xf32>
    %cst_64 = arith.constant 1.000000e+00 : f32
    %229 = vector.broadcast %cst_64 : f32 to vector<2x16xf32>
    %230 = arith.subf %229, %222 : vector<2x16xf32>
    %231 = arith.mulf %230, %228 : vector<2x16xf32>
    %232 = arith.mulf %222, %178 : vector<2x16xf32>
    %233 = arith.addf %231, %232 : vector<2x16xf32>
    %234 = arith.truncf %205 : vector<2x32xf32> to vector<2x32xbf16>
    %cst_65 = arith.constant dense<0.000000e+00> : vector<2x96xf32>
    %235 = tpu.matmul %234, %0, %cst_65 {dimension_numbers = #tpu.dot_dimension_numbers<[1], [0], [0], [1], [0, 0, 1, 1], [], []>} : vector<2x32xbf16>, vector<32x96xbf16>, vector<2x96xf32> -> vector<2x96xf32>
    %c4 = arith.constant 4 : index
    %c0_66 = arith.constant 0 : index
    %c0_67 = arith.constant 0 : index
    %236 = vector.load %arg0[%c4, %c0_66, %c0_67] : memref<8x2x96xf32, #tpu.memory_space<vmem>>, vector<1x2x96xf32>
    %237 = vector.shape_cast %236 : vector<1x2x96xf32> to vector<2x96xf32>
    %238 = vector.extract_strided_slice %237 {offsets = [0, 0], sizes = [2, 64], strides = [1, 1]} : vector<2x96xf32> to vector<2x64xf32>
    %239 = vector.extract_strided_slice %235 {offsets = [0, 0], sizes = [2, 64], strides = [1, 1]} : vector<2x96xf32> to vector<2x64xf32>
    %240 = arith.addf %238, %239 : vector<2x64xf32>
    %cst_68 = arith.constant 5.000000e-01 : f32
    %241 = vector.broadcast %cst_68 : f32 to vector<2x64xf32>
    %242 = arith.mulf %241, %240 : vector<2x64xf32>
    %243 = math.tanh %242 : vector<2x64xf32>
    %cst_69 = arith.constant 5.000000e-01 : f32
    %244 = vector.broadcast %cst_69 : f32 to vector<2x64xf32>
    %245 = arith.mulf %244, %243 : vector<2x64xf32>
    %cst_70 = arith.constant 5.000000e-01 : f32
    %246 = vector.broadcast %cst_70 : f32 to vector<2x64xf32>
    %247 = arith.addf %245, %246 : vector<2x64xf32>
    %248 = vector.extract_strided_slice %247 {offsets = [0, 0], sizes = [2, 32], strides = [1, 1]} : vector<2x64xf32> to vector<2x32xf32>
    %249 = vector.extract_strided_slice %247 {offsets = [0, 32], sizes = [2, 32], strides = [1, 1]} : vector<2x64xf32> to vector<2x32xf32>
    %250 = vector.extract_strided_slice %237 {offsets = [0, 64], sizes = [2, 32], strides = [1, 1]} : vector<2x96xf32> to vector<2x32xf32>
    %251 = vector.extract_strided_slice %235 {offsets = [0, 64], sizes = [2, 32], strides = [1, 1]} : vector<2x96xf32> to vector<2x32xf32>
    %252 = arith.addf %251, %5 : vector<2x32xf32>
    %253 = arith.mulf %248, %252 : vector<2x32xf32>
    %254 = arith.addf %250, %253 : vector<2x32xf32>
    %255 = math.tanh %254 : vector<2x32xf32>
    %cst_71 = arith.constant 1.000000e+00 : f32
    %256 = vector.broadcast %cst_71 : f32 to vector<2x32xf32>
    %257 = arith.subf %256, %249 : vector<2x32xf32>
    %258 = arith.mulf %257, %255 : vector<2x32xf32>
    %259 = arith.mulf %249, %205 : vector<2x32xf32>
    %260 = arith.addf %258, %259 : vector<2x32xf32>
    %261 = arith.truncf %260 : vector<2x32xf32> to vector<2x32xbf16>
    %cst_72 = arith.constant dense<0.000000e+00> : vector<2x48xf32>
    %262 = tpu.matmul %261, %1, %cst_72 {dimension_numbers = #tpu.dot_dimension_numbers<[1], [0], [0], [1], [0, 0, 1, 1], [], []>} : vector<2x32xbf16>, vector<32x48xbf16>, vector<2x48xf32> -> vector<2x48xf32>
    %263 = arith.addf %262, %8 : vector<2x48xf32>
    %264 = arith.truncf %233 : vector<2x16xf32> to vector<2x16xbf16>
    %cst_73 = arith.constant dense<0.000000e+00> : vector<2x48xf32>
    %265 = tpu.matmul %264, %2, %cst_73 {dimension_numbers = #tpu.dot_dimension_numbers<[1], [0], [0], [1], [0, 0, 1, 1], [], []>} : vector<2x16xbf16>, vector<16x48xbf16>, vector<2x48xf32> -> vector<2x48xf32>
    %266 = vector.extract_strided_slice %263 {offsets = [0, 0], sizes = [2, 32], strides = [1, 1]} : vector<2x48xf32> to vector<2x32xf32>
    %267 = vector.extract_strided_slice %265 {offsets = [0, 0], sizes = [2, 32], strides = [1, 1]} : vector<2x48xf32> to vector<2x32xf32>
    %268 = arith.addf %266, %267 : vector<2x32xf32>
    %cst_74 = arith.constant 5.000000e-01 : f32
    %269 = vector.broadcast %cst_74 : f32 to vector<2x32xf32>
    %270 = arith.mulf %269, %268 : vector<2x32xf32>
    %271 = math.tanh %270 : vector<2x32xf32>
    %cst_75 = arith.constant 5.000000e-01 : f32
    %272 = vector.broadcast %cst_75 : f32 to vector<2x32xf32>
    %273 = arith.mulf %272, %271 : vector<2x32xf32>
    %cst_76 = arith.constant 5.000000e-01 : f32
    %274 = vector.broadcast %cst_76 : f32 to vector<2x32xf32>
    %275 = arith.addf %273, %274 : vector<2x32xf32>
    %276 = vector.extract_strided_slice %275 {offsets = [0, 0], sizes = [2, 16], strides = [1, 1]} : vector<2x32xf32> to vector<2x16xf32>
    %277 = vector.extract_strided_slice %275 {offsets = [0, 16], sizes = [2, 16], strides = [1, 1]} : vector<2x32xf32> to vector<2x16xf32>
    %278 = vector.extract_strided_slice %263 {offsets = [0, 32], sizes = [2, 16], strides = [1, 1]} : vector<2x48xf32> to vector<2x16xf32>
    %279 = vector.extract_strided_slice %265 {offsets = [0, 32], sizes = [2, 16], strides = [1, 1]} : vector<2x48xf32> to vector<2x16xf32>
    %280 = arith.addf %279, %11 : vector<2x16xf32>
    %281 = arith.mulf %276, %280 : vector<2x16xf32>
    %282 = arith.addf %278, %281 : vector<2x16xf32>
    %283 = math.tanh %282 : vector<2x16xf32>
    %cst_77 = arith.constant 1.000000e+00 : f32
    %284 = vector.broadcast %cst_77 : f32 to vector<2x16xf32>
    %285 = arith.subf %284, %277 : vector<2x16xf32>
    %286 = arith.mulf %285, %283 : vector<2x16xf32>
    %287 = arith.mulf %277, %233 : vector<2x16xf32>
    %288 = arith.addf %286, %287 : vector<2x16xf32>
    %289 = arith.truncf %260 : vector<2x32xf32> to vector<2x32xbf16>
    %cst_78 = arith.constant dense<0.000000e+00> : vector<2x96xf32>
    %290 = tpu.matmul %289, %0, %cst_78 {dimension_numbers = #tpu.dot_dimension_numbers<[1], [0], [0], [1], [0, 0, 1, 1], [], []>} : vector<2x32xbf16>, vector<32x96xbf16>, vector<2x96xf32> -> vector<2x96xf32>
    %c5 = arith.constant 5 : index
    %c0_79 = arith.constant 0 : index
    %c0_80 = arith.constant 0 : index
    %291 = vector.load %arg0[%c5, %c0_79, %c0_80] : memref<8x2x96xf32, #tpu.memory_space<vmem>>, vector<1x2x96xf32>
    %292 = vector.shape_cast %291 : vector<1x2x96xf32> to vector<2x96xf32>
    %293 = vector.extract_strided_slice %292 {offsets = [0, 0], sizes = [2, 64], strides = [1, 1]} : vector<2x96xf32> to vector<2x64xf32>
    %294 = vector.extract_strided_slice %290 {offsets = [0, 0], sizes = [2, 64], strides = [1, 1]} : vector<2x96xf32> to vector<2x64xf32>
    %295 = arith.addf %293, %294 : vector<2x64xf32>
    %cst_81 = arith.constant 5.000000e-01 : f32
    %296 = vector.broadcast %cst_81 : f32 to vector<2x64xf32>
    %297 = arith.mulf %296, %295 : vector<2x64xf32>
    %298 = math.tanh %297 : vector<2x64xf32>
    %cst_82 = arith.constant 5.000000e-01 : f32
    %299 = vector.broadcast %cst_82 : f32 to vector<2x64xf32>
    %300 = arith.mulf %299, %298 : vector<2x64xf32>
    %cst_83 = arith.constant 5.000000e-01 : f32
    %301 = vector.broadcast %cst_83 : f32 to vector<2x64xf32>
    %302 = arith.addf %300, %301 : vector<2x64xf32>
    %303 = vector.extract_strided_slice %302 {offsets = [0, 0], sizes = [2, 32], strides = [1, 1]} : vector<2x64xf32> to vector<2x32xf32>
    %304 = vector.extract_strided_slice %302 {offsets = [0, 32], sizes = [2, 32], strides = [1, 1]} : vector<2x64xf32> to vector<2x32xf32>
    %305 = vector.extract_strided_slice %292 {offsets = [0, 64], sizes = [2, 32], strides = [1, 1]} : vector<2x96xf32> to vector<2x32xf32>
    %306 = vector.extract_strided_slice %290 {offsets = [0, 64], sizes = [2, 32], strides = [1, 1]} : vector<2x96xf32> to vector<2x32xf32>
    %307 = arith.addf %306, %5 : vector<2x32xf32>
    %308 = arith.mulf %303, %307 : vector<2x32xf32>
    %309 = arith.addf %305, %308 : vector<2x32xf32>
    %310 = math.tanh %309 : vector<2x32xf32>
    %cst_84 = arith.constant 1.000000e+00 : f32
    %311 = vector.broadcast %cst_84 : f32 to vector<2x32xf32>
    %312 = arith.subf %311, %304 : vector<2x32xf32>
    %313 = arith.mulf %312, %310 : vector<2x32xf32>
    %314 = arith.mulf %304, %260 : vector<2x32xf32>
    %315 = arith.addf %313, %314 : vector<2x32xf32>
    %316 = arith.truncf %315 : vector<2x32xf32> to vector<2x32xbf16>
    %cst_85 = arith.constant dense<0.000000e+00> : vector<2x48xf32>
    %317 = tpu.matmul %316, %1, %cst_85 {dimension_numbers = #tpu.dot_dimension_numbers<[1], [0], [0], [1], [0, 0, 1, 1], [], []>} : vector<2x32xbf16>, vector<32x48xbf16>, vector<2x48xf32> -> vector<2x48xf32>
    %318 = arith.addf %317, %8 : vector<2x48xf32>
    %319 = arith.truncf %288 : vector<2x16xf32> to vector<2x16xbf16>
    %cst_86 = arith.constant dense<0.000000e+00> : vector<2x48xf32>
    %320 = tpu.matmul %319, %2, %cst_86 {dimension_numbers = #tpu.dot_dimension_numbers<[1], [0], [0], [1], [0, 0, 1, 1], [], []>} : vector<2x16xbf16>, vector<16x48xbf16>, vector<2x48xf32> -> vector<2x48xf32>
    %321 = vector.extract_strided_slice %318 {offsets = [0, 0], sizes = [2, 32], strides = [1, 1]} : vector<2x48xf32> to vector<2x32xf32>
    %322 = vector.extract_strided_slice %320 {offsets = [0, 0], sizes = [2, 32], strides = [1, 1]} : vector<2x48xf32> to vector<2x32xf32>
    %323 = arith.addf %321, %322 : vector<2x32xf32>
    %cst_87 = arith.constant 5.000000e-01 : f32
    %324 = vector.broadcast %cst_87 : f32 to vector<2x32xf32>
    %325 = arith.mulf %324, %323 : vector<2x32xf32>
    %326 = math.tanh %325 : vector<2x32xf32>
    %cst_88 = arith.constant 5.000000e-01 : f32
    %327 = vector.broadcast %cst_88 : f32 to vector<2x32xf32>
    %328 = arith.mulf %327, %326 : vector<2x32xf32>
    %cst_89 = arith.constant 5.000000e-01 : f32
    %329 = vector.broadcast %cst_89 : f32 to vector<2x32xf32>
    %330 = arith.addf %328, %329 : vector<2x32xf32>
    %331 = vector.extract_strided_slice %330 {offsets = [0, 0], sizes = [2, 16], strides = [1, 1]} : vector<2x32xf32> to vector<2x16xf32>
    %332 = vector.extract_strided_slice %330 {offsets = [0, 16], sizes = [2, 16], strides = [1, 1]} : vector<2x32xf32> to vector<2x16xf32>
    %333 = vector.extract_strided_slice %318 {offsets = [0, 32], sizes = [2, 16], strides = [1, 1]} : vector<2x48xf32> to vector<2x16xf32>
    %334 = vector.extract_strided_slice %320 {offsets = [0, 32], sizes = [2, 16], strides = [1, 1]} : vector<2x48xf32> to vector<2x16xf32>
    %335 = arith.addf %334, %11 : vector<2x16xf32>
    %336 = arith.mulf %331, %335 : vector<2x16xf32>
    %337 = arith.addf %333, %336 : vector<2x16xf32>
    %338 = math.tanh %337 : vector<2x16xf32>
    %cst_90 = arith.constant 1.000000e+00 : f32
    %339 = vector.broadcast %cst_90 : f32 to vector<2x16xf32>
    %340 = arith.subf %339, %332 : vector<2x16xf32>
    %341 = arith.mulf %340, %338 : vector<2x16xf32>
    %342 = arith.mulf %332, %288 : vector<2x16xf32>
    %343 = arith.addf %341, %342 : vector<2x16xf32>
    %344 = arith.truncf %315 : vector<2x32xf32> to vector<2x32xbf16>
    %cst_91 = arith.constant dense<0.000000e+00> : vector<2x96xf32>
    %345 = tpu.matmul %344, %0, %cst_91 {dimension_numbers = #tpu.dot_dimension_numbers<[1], [0], [0], [1], [0, 0, 1, 1], [], []>} : vector<2x32xbf16>, vector<32x96xbf16>, vector<2x96xf32> -> vector<2x96xf32>
    %c6 = arith.constant 6 : index
    %c0_92 = arith.constant 0 : index
    %c0_93 = arith.constant 0 : index
    %346 = vector.load %arg0[%c6, %c0_92, %c0_93] : memref<8x2x96xf32, #tpu.memory_space<vmem>>, vector<1x2x96xf32>
    %347 = vector.shape_cast %346 : vector<1x2x96xf32> to vector<2x96xf32>
    %348 = vector.extract_strided_slice %347 {offsets = [0, 0], sizes = [2, 64], strides = [1, 1]} : vector<2x96xf32> to vector<2x64xf32>
    %349 = vector.extract_strided_slice %345 {offsets = [0, 0], sizes = [2, 64], strides = [1, 1]} : vector<2x96xf32> to vector<2x64xf32>
    %350 = arith.addf %348, %349 : vector<2x64xf32>
    %cst_94 = arith.constant 5.000000e-01 : f32
    %351 = vector.broadcast %cst_94 : f32 to vector<2x64xf32>
    %352 = arith.mulf %351, %350 : vector<2x64xf32>
    %353 = math.tanh %352 : vector<2x64xf32>
    %cst_95 = arith.constant 5.000000e-01 : f32
    %354 = vector.broadcast %cst_95 : f32 to vector<2x64xf32>
    %355 = arith.mulf %354, %353 : vector<2x64xf32>
    %cst_96 = arith.constant 5.000000e-01 : f32
    %356 = vector.broadcast %cst_96 : f32 to vector<2x64xf32>
    %357 = arith.addf %355, %356 : vector<2x64xf32>
    %358 = vector.extract_strided_slice %357 {offsets = [0, 0], sizes = [2, 32], strides = [1, 1]} : vector<2x64xf32> to vector<2x32xf32>
    %359 = vector.extract_strided_slice %357 {offsets = [0, 32], sizes = [2, 32], strides = [1, 1]} : vector<2x64xf32> to vector<2x32xf32>
    %360 = vector.extract_strided_slice %347 {offsets = [0, 64], sizes = [2, 32], strides = [1, 1]} : vector<2x96xf32> to vector<2x32xf32>
    %361 = vector.extract_strided_slice %345 {offsets = [0, 64], sizes = [2, 32], strides = [1, 1]} : vector<2x96xf32> to vector<2x32xf32>
    %362 = arith.addf %361, %5 : vector<2x32xf32>
    %363 = arith.mulf %358, %362 : vector<2x32xf32>
    %364 = arith.addf %360, %363 : vector<2x32xf32>
    %365 = math.tanh %364 : vector<2x32xf32>
    %cst_97 = arith.constant 1.000000e+00 : f32
    %366 = vector.broadcast %cst_97 : f32 to vector<2x32xf32>
    %367 = arith.subf %366, %359 : vector<2x32xf32>
    %368 = arith.mulf %367, %365 : vector<2x32xf32>
    %369 = arith.mulf %359, %315 : vector<2x32xf32>
    %370 = arith.addf %368, %369 : vector<2x32xf32>
    %371 = arith.truncf %370 : vector<2x32xf32> to vector<2x32xbf16>
    %cst_98 = arith.constant dense<0.000000e+00> : vector<2x48xf32>
    %372 = tpu.matmul %371, %1, %cst_98 {dimension_numbers = #tpu.dot_dimension_numbers<[1], [0], [0], [1], [0, 0, 1, 1], [], []>} : vector<2x32xbf16>, vector<32x48xbf16>, vector<2x48xf32> -> vector<2x48xf32>
    %373 = arith.addf %372, %8 : vector<2x48xf32>
    %374 = arith.truncf %343 : vector<2x16xf32> to vector<2x16xbf16>
    %cst_99 = arith.constant dense<0.000000e+00> : vector<2x48xf32>
    %375 = tpu.matmul %374, %2, %cst_99 {dimension_numbers = #tpu.dot_dimension_numbers<[1], [0], [0], [1], [0, 0, 1, 1], [], []>} : vector<2x16xbf16>, vector<16x48xbf16>, vector<2x48xf32> -> vector<2x48xf32>
    %376 = vector.extract_strided_slice %373 {offsets = [0, 0], sizes = [2, 32], strides = [1, 1]} : vector<2x48xf32> to vector<2x32xf32>
    %377 = vector.extract_strided_slice %375 {offsets = [0, 0], sizes = [2, 32], strides = [1, 1]} : vector<2x48xf32> to vector<2x32xf32>
    %378 = arith.addf %376, %377 : vector<2x32xf32>
    %cst_100 = arith.constant 5.000000e-01 : f32
    %379 = vector.broadcast %cst_100 : f32 to vector<2x32xf32>
    %380 = arith.mulf %379, %378 : vector<2x32xf32>
    %381 = math.tanh %380 : vector<2x32xf32>
    %cst_101 = arith.constant 5.000000e-01 : f32
    %382 = vector.broadcast %cst_101 : f32 to vector<2x32xf32>
    %383 = arith.mulf %382, %381 : vector<2x32xf32>
    %cst_102 = arith.constant 5.000000e-01 : f32
    %384 = vector.broadcast %cst_102 : f32 to vector<2x32xf32>
    %385 = arith.addf %383, %384 : vector<2x32xf32>
    %386 = vector.extract_strided_slice %385 {offsets = [0, 0], sizes = [2, 16], strides = [1, 1]} : vector<2x32xf32> to vector<2x16xf32>
    %387 = vector.extract_strided_slice %385 {offsets = [0, 16], sizes = [2, 16], strides = [1, 1]} : vector<2x32xf32> to vector<2x16xf32>
    %388 = vector.extract_strided_slice %373 {offsets = [0, 32], sizes = [2, 16], strides = [1, 1]} : vector<2x48xf32> to vector<2x16xf32>
    %389 = vector.extract_strided_slice %375 {offsets = [0, 32], sizes = [2, 16], strides = [1, 1]} : vector<2x48xf32> to vector<2x16xf32>
    %390 = arith.addf %389, %11 : vector<2x16xf32>
    %391 = arith.mulf %386, %390 : vector<2x16xf32>
    %392 = arith.addf %388, %391 : vector<2x16xf32>
    %393 = math.tanh %392 : vector<2x16xf32>
    %cst_103 = arith.constant 1.000000e+00 : f32
    %394 = vector.broadcast %cst_103 : f32 to vector<2x16xf32>
    %395 = arith.subf %394, %387 : vector<2x16xf32>
    %396 = arith.mulf %395, %393 : vector<2x16xf32>
    %397 = arith.mulf %387, %343 : vector<2x16xf32>
    %398 = arith.addf %396, %397 : vector<2x16xf32>
    %399 = arith.truncf %370 : vector<2x32xf32> to vector<2x32xbf16>
    %cst_104 = arith.constant dense<0.000000e+00> : vector<2x96xf32>
    %400 = tpu.matmul %399, %0, %cst_104 {dimension_numbers = #tpu.dot_dimension_numbers<[1], [0], [0], [1], [0, 0, 1, 1], [], []>} : vector<2x32xbf16>, vector<32x96xbf16>, vector<2x96xf32> -> vector<2x96xf32>
    %c7 = arith.constant 7 : index
    %c0_105 = arith.constant 0 : index
    %c0_106 = arith.constant 0 : index
    %401 = vector.load %arg0[%c7, %c0_105, %c0_106] : memref<8x2x96xf32, #tpu.memory_space<vmem>>, vector<1x2x96xf32>
    %402 = vector.shape_cast %401 : vector<1x2x96xf32> to vector<2x96xf32>
    %403 = vector.extract_strided_slice %402 {offsets = [0, 0], sizes = [2, 64], strides = [1, 1]} : vector<2x96xf32> to vector<2x64xf32>
    %404 = vector.extract_strided_slice %400 {offsets = [0, 0], sizes = [2, 64], strides = [1, 1]} : vector<2x96xf32> to vector<2x64xf32>
    %405 = arith.addf %403, %404 : vector<2x64xf32>
    %cst_107 = arith.constant 5.000000e-01 : f32
    %406 = vector.broadcast %cst_107 : f32 to vector<2x64xf32>
    %407 = arith.mulf %406, %405 : vector<2x64xf32>
    %408 = math.tanh %407 : vector<2x64xf32>
    %cst_108 = arith.constant 5.000000e-01 : f32
    %409 = vector.broadcast %cst_108 : f32 to vector<2x64xf32>
    %410 = arith.mulf %409, %408 : vector<2x64xf32>
    %cst_109 = arith.constant 5.000000e-01 : f32
    %411 = vector.broadcast %cst_109 : f32 to vector<2x64xf32>
    %412 = arith.addf %410, %411 : vector<2x64xf32>
    %413 = vector.extract_strided_slice %412 {offsets = [0, 0], sizes = [2, 32], strides = [1, 1]} : vector<2x64xf32> to vector<2x32xf32>
    %414 = vector.extract_strided_slice %412 {offsets = [0, 32], sizes = [2, 32], strides = [1, 1]} : vector<2x64xf32> to vector<2x32xf32>
    %415 = vector.extract_strided_slice %402 {offsets = [0, 64], sizes = [2, 32], strides = [1, 1]} : vector<2x96xf32> to vector<2x32xf32>
    %416 = vector.extract_strided_slice %400 {offsets = [0, 64], sizes = [2, 32], strides = [1, 1]} : vector<2x96xf32> to vector<2x32xf32>
    %417 = arith.addf %416, %5 : vector<2x32xf32>
    %418 = arith.mulf %413, %417 : vector<2x32xf32>
    %419 = arith.addf %415, %418 : vector<2x32xf32>
    %420 = math.tanh %419 : vector<2x32xf32>
    %cst_110 = arith.constant 1.000000e+00 : f32
    %421 = vector.broadcast %cst_110 : f32 to vector<2x32xf32>
    %422 = arith.subf %421, %414 : vector<2x32xf32>
    %423 = arith.mulf %422, %420 : vector<2x32xf32>
    %424 = arith.mulf %414, %370 : vector<2x32xf32>
    %425 = arith.addf %423, %424 : vector<2x32xf32>
    %426 = arith.truncf %425 : vector<2x32xf32> to vector<2x32xbf16>
    %cst_111 = arith.constant dense<0.000000e+00> : vector<2x48xf32>
    %427 = tpu.matmul %426, %1, %cst_111 {dimension_numbers = #tpu.dot_dimension_numbers<[1], [0], [0], [1], [0, 0, 1, 1], [], []>} : vector<2x32xbf16>, vector<32x48xbf16>, vector<2x48xf32> -> vector<2x48xf32>
    %428 = arith.addf %427, %8 : vector<2x48xf32>
    %429 = arith.truncf %398 : vector<2x16xf32> to vector<2x16xbf16>
    %cst_112 = arith.constant dense<0.000000e+00> : vector<2x48xf32>
    %430 = tpu.matmul %429, %2, %cst_112 {dimension_numbers = #tpu.dot_dimension_numbers<[1], [0], [0], [1], [0, 0, 1, 1], [], []>} : vector<2x16xbf16>, vector<16x48xbf16>, vector<2x48xf32> -> vector<2x48xf32>
    %431 = vector.extract_strided_slice %428 {offsets = [0, 0], sizes = [2, 32], strides = [1, 1]} : vector<2x48xf32> to vector<2x32xf32>
    %432 = vector.extract_strided_slice %430 {offsets = [0, 0], sizes = [2, 32], strides = [1, 1]} : vector<2x48xf32> to vector<2x32xf32>
    %433 = arith.addf %431, %432 : vector<2x32xf32>
    %cst_113 = arith.constant 5.000000e-01 : f32
    %434 = vector.broadcast %cst_113 : f32 to vector<2x32xf32>
    %435 = arith.mulf %434, %433 : vector<2x32xf32>
    %436 = math.tanh %435 : vector<2x32xf32>
    %cst_114 = arith.constant 5.000000e-01 : f32
    %437 = vector.broadcast %cst_114 : f32 to vector<2x32xf32>
    %438 = arith.mulf %437, %436 : vector<2x32xf32>
    %cst_115 = arith.constant 5.000000e-01 : f32
    %439 = vector.broadcast %cst_115 : f32 to vector<2x32xf32>
    %440 = arith.addf %438, %439 : vector<2x32xf32>
    %441 = vector.extract_strided_slice %440 {offsets = [0, 0], sizes = [2, 16], strides = [1, 1]} : vector<2x32xf32> to vector<2x16xf32>
    %442 = vector.extract_strided_slice %440 {offsets = [0, 16], sizes = [2, 16], strides = [1, 1]} : vector<2x32xf32> to vector<2x16xf32>
    %443 = vector.extract_strided_slice %428 {offsets = [0, 32], sizes = [2, 16], strides = [1, 1]} : vector<2x48xf32> to vector<2x16xf32>
    %444 = vector.extract_strided_slice %430 {offsets = [0, 32], sizes = [2, 16], strides = [1, 1]} : vector<2x48xf32> to vector<2x16xf32>
    %445 = arith.addf %444, %11 : vector<2x16xf32>
    %446 = arith.mulf %441, %445 : vector<2x16xf32>
    %447 = arith.addf %443, %446 : vector<2x16xf32>
    %448 = math.tanh %447 : vector<2x16xf32>
    %cst_116 = arith.constant 1.000000e+00 : f32
    %449 = vector.broadcast %cst_116 : f32 to vector<2x16xf32>
    %450 = arith.subf %449, %442 : vector<2x16xf32>
    %451 = arith.mulf %450, %448 : vector<2x16xf32>
    %452 = arith.mulf %442, %398 : vector<2x16xf32>
    %453 = arith.addf %451, %452 : vector<2x16xf32>
    %c0_117 = arith.constant 0 : index
    %c0_118 = arith.constant 0 : index
    %454 = vector.load %arg7[%c0_117, %c0_118] : memref<2x16xf32, #tpu.memory_space<vmem>>, vector<2x16xf32>
    tpu.vector_store %arg7[%c0_117, %c0_118], %453 {strides = array<i32>} : memref<2x16xf32, #tpu.memory_space<vmem>>, vector<2x16xf32>,
    return
  }
}

</mosaic_0001>

<bundles_post_ra>
// kernel: asl_gru_forward.1
= control target key start
LH: loop header
LB: loop body
LE: loop exit
PB: predicated region body
PF: predicated region fallthrough
CT: control target
= control target key end

     0   :  { %v1981_v1 = vmov 0.0   ;;  %vm1982_vm0 = vmmov 0   ;;  %s1983_s30 = smov 64   ;;  %s2416_s0 = inlined_call_operand.vmem [shape: f32[8,2,96], index: 0, kind: input, shape index: {}]   ;;  %s2417_s1 = inlined_call_operand.vmem [shape: bf16[32,96], index: 1, kind: input, shape index: {}]   ;;  %s2418_s2 = inlined_call_operand.vmem [shape: f32[1,32], index: 2, kind: input, shape index: {}]   ;;  %s2419_s3 = inlined_call_operand.vmem [shape: bf16[32,48], index: 3, kind: input, shape index: {}]   ;;  %s2420_s4 = inlined_call_operand.vmem [shape: bf16[16,48], index: 4, kind: input, shape index: {}]   ;;  %s2421_s5 = inlined_call_operand.vmem [shape: f32[1,48], index: 5, kind: input, shape index: {}]   ;;  %s2422_s6 = inlined_call_operand.vmem [shape: f32[1,16], index: 6, kind: input, shape index: {}]   ;;  %s2423_s7 = inlined_call_operand.hbm [shape: f32[2,16], index: 7, kind: output, shape index: {}]  }
   0x1   :  { %v2032_v0 = vld [vmem:[%s2417_s1] sm:$0xff]   ;;  %1701 = vmatprep.subr.bf16.mxu0 %v1981_v1  ;;  %1709 = vmatprep.subr.bf16.mxu1 %v1981_v1  ;;  %v2040_v2 = vld [vmem:[%s2417_s1 + $0x8] sm:$0xff]  }
   0x2   :  { %1702 = vmatpush3.bf16.msra.mxu0 %v2032_v0  ;;  %1705 = vmatprep.mubr.msk.bf16.mxu0 %vm1982_vm0, %v1981_v1  ;;  %v1600_v3 = vld [vmem:[%s2418_s2] ss:$0 sm:$0xff] }
   0x3   :  { %1703 = vmatprep.subr.bf16.mxu0 %v1981_v1  ;;  %119 = vrot.lane.b32.xlu0 %v1600_v3, %s1983_s30 }
   0x4   :  { %1713 = vmatprep.mubr.msk.bf16.mxu1 %vm1982_vm0, %v1981_v1 }
   0x5   :  { %12 = vsyncpa [#allocation3], 0  ;;  %v1984_v4 = vmov 0   ;;  %v113_v11 = vld [vmem:[%s2416_s0] sm:$0x3]  ;;  %v2078_v23 = vld [vmem:[%s2419_s3 + $0x8] sm:$0xff]  }
   0x6   :  { %1704 = vmatpush3.bf16.msra.mxu0 %v2040_v2  ;;  %v2066_v21 = vld [vmem:[%s2420_s4] sm:$0xff]   ;;  %s1985_s4 = smov 96   ;;  %s1986_s16 = smov 32   ;;  %vm69_vm1 = vcmask 261120   ;;  %vm207_vm2 = vcmask 130048   ;;  %vm1584_vm3 = vcmask 123904  }
   0x7   :  { %1717 = vmatprep.subr.bf16.mxu0 %v1981_v1  ;;  %v2071_v22 = vld [vmem:[%s2419_s3] sm:$0xff]   ;;  %s1987_s20 = smov 112  }
   0x8   :  { %1710 = vmatpush3.bf16.msra.mxu1 %v2071_v22  ;;  %v1602_v25 = vld [vmem:[%s2422_s6] ss:$0 sm:$0xff]  ;;  %v1610_v57 = vld [vmem:[%s2416_s0 + $0x2] sm:$0x3] }
   0x9   :  { %1706 = vmatmul.mubr.bf16.vlgmr.msra.gmra.mrb[0].mxu0 %v1984_v4  ;;  %1711 = vmatprep.subr.bf16.mxu1 %v1981_v1  ;;  %v2119_v39 = vld [vmem:[%s2421_s5] ss:$0 sm:$0xff] }
   0xa   :  { %1719 = vmatprep.mubr.msk.bf16.mxu0 %vm1982_vm0, %v1981_v1  ;;  %1718 = vmatpush3.bf16.msra.mxu0 %v2066_v21 }
   0xb   :  { %1731 = vmatprep.subr.bf16.mxu0 %v1981_v1 }
   0xc   :  { %1712 = vmatpush3.bf16.msra.mxu1 %v2078_v23 }
   0xd   :  { %1723 = vmatprep.subr.bf16.mxu1 %v1981_v1 }
  0x11   :  { %1720 = vmatmul.mubr.bf16.vlgmr.msra.gmra.mrb[4].mxu0 %v1984_v4 }
  0x12   :  { %1732 = vmatpush3.bf16.msra.mxu0 %v2071_v22  ;;  %1735 = vmatprep.mubr.msk.bf16.mxu0 %vm1982_vm0, %v1981_v1 }
  0x13   :  { %1733 = vmatprep.subr.bf16.mxu0 %v1981_v1 }
  0x16   :  { %1734 = vmatpush3.bf16.msra.mxu0 %v2078_v23 }
  0x17   :  { %1745 = vmatprep.subr.bf16.mxu0 %v1981_v1 }
  0x75   :  { %v2055_v5 = vpop.permute.xlu0 %119 }
  0xdc   :  { %v107_v6 = vpop.f32.mrb[0].mxu0 }
  0xdd   :  { %v122_v7 = vadd.f32 %v2055_v5, %v107_v6  ;;  %v1707_v8 = vpop.f32.mrb[1].mxu0  ;;  %v114_v12 = vadd.f32 %v113_v11, %v107_v6 }
  0xde   :  { %v110_v9 = vpop.f32.mrb[2].mxu0 }
  0xdf   :  { %124 = vrot.lane.b32.xlu0 %v122_v7, %s1983_s30  ;;  %v1708_v10 = vpop.f32.mrb[3].mxu0  ;;  %v115_v13 = vmul.f32 0.5, %v114_v12 }
  0xe1   :  { %1890 = vtanh.f32 %v115_v13 }
  0xe4   :  { %v244_v32 = vpop.f32.mrb[4].mxu0 }
  0xe5   :  { %v1721_v33 = vpop.f32.mrb[5].mxu0 }
  0xe6   :  { %v247_v34 = vpop.f32.mrb[6].mxu0 }
  0xe7   :  { %v1722_v35 = vpop.f32.mrb[7].mxu0 }
  0xeb   :  { %v1891_v14 = vpop.eup %1890 }
  0xec   :  { %v117_v15 = vmul.f32 0.5, %v1891_v14 }
  0xee   :  { %v118_v16 = vadd.f32 0.5, %v117_v15 }
  0xf0   :  { %v134_v26 = vsub.f32 1.0, %v118_v16  ;;  %v140_v28 = vmul.f32 0.0, %v118_v16 }
 0x151   :  { %v125_v17 = vpop.permute.xlu0 %124 }
 0x152   :  { %v127_v18 = vmul.f32 %v125_v17, %v118_v16 }
 0x154   :  { %129 = vrot.lane.b32.xlu1 %v127_v18, %s1983_s30 }
 0x1c6   :  { %v130_v19 = vpop.permute.xlu1 %129 }
 0x1c7   :  { %v132_v20 = vadd.f32 %v130_v19, %v113_v11 }
 0x1c9   :  { %1892 = vtanh.f32 %v132_v20 }
 0x1d3   :  { %v1893_v24 = vpop.eup %1892 }
 0x1d4   :  { %136 = vrot.lane.b32.xlu1 %v1893_v24, %s1985_s4 }
 0x1d8   :  { %255 = vrot.lane.b32.xlu1 %v1602_v25, %s1986_s16 }
 0x246   :  { %v137_v27 = vpop.permute.xlu1 %136 }
 0x247   :  { %v139_v29 = vmul.f32 %v137_v27, %v134_v26 }
 0x249   :  { %v2095_v30 = vadd.f32 %v140_v28, %v139_v29 }
 0x24a   :  { %v2100_v36 = vpop.permute.xlu1 %255 }
 0x24b   :  { %v142_v31 = vpack.c.bf16 %v2095_v30, %v2095_v30  ;;  %v258_v37 = vadd.f32 %v2100_v36, %v244_v32 }
 0x24d   :  { %144 = vrot.lane.b32.xlu0 %v142_v31, %s1985_s4  ;;  %260 = vrot.lane.b32.xlu1 %v258_v37, %s1985_s4 }
 0x2bf   :  { %v145_v38 = vpop.permute.xlu0 %144  ;;  %v261_v54 = vpop.permute.xlu1 %260 }
 0x2c0   :  { %1714 = vmatmul.mubr.msk.bf16.vlgmr.msra.gmra.mrb[0].mxu1 %vm69_vm1, %v145_v38 }
 0x2c1   :  { %1724 = vmatpush3.bf16.msra.mxu1 %v2032_v0  ;;  %1727 = vmatprep.mubr.msk.bf16.mxu1 %vm1982_vm0, %v1981_v1 }
 0x2c2   :  { %1725 = vmatprep.subr.bf16.mxu1 %v1981_v1 }
 0x2c5   :  { %1726 = vmatpush3.bf16.msra.mxu1 %v2040_v2 }
 0x2c6   :  { %1739 = vmatprep.subr.bf16.mxu1 %v1981_v1 }
 0x2c8   :  { %1728 = vmatmul.mubr.msk.bf16.vlgmr.msra.gmra.mrb[4].mxu1 %vm69_vm1, %v145_v38 }
 0x2c9   :  { %1740 = vmatpush3.bf16.msra.mxu1 %v2066_v21  ;;  %1741 = vmatprep.mubr.msk.bf16.mxu1 %vm1982_vm0, %v1981_v1 }
 0x2ca   :  { %1753 = vmatprep.subr.bf16.mxu1 %v1981_v1 }
 0x393   :  { %v195_v40 = vpop.f32.mrb[0].mxu1 }
 0x394   :  { %v196_v41 = vadd.f32 %v2119_v39, %v195_v40  ;;  %v1715_v42 = vpop.f32.mrb[1].mxu1 }
 0x395   :  { %v198_v43 = vpop.f32.mrb[2].mxu1 }
 0x396   :  { %v250_v44 = vadd.f32 %v244_v32, %v196_v41  ;;  %v1716_v45 = vpop.f32.mrb[3].mxu1 }
 0x398   :  { %v251_v46 = vmul.f32 0.5, %v250_v44 }
 0x39a   :  { %1894 = vtanh.f32 %v251_v46 }
 0x39b   :  { %v312_v47 = vpop.f32.mrb[4].mxu1 }
 0x39c   :  { %v325_v48 = vadd.f32 %v312_v47, %v2055_v5  ;;  %v1729_v49 = vpop.f32.mrb[5].mxu1  ;;  %v320_v58 = vadd.f32 %v1610_v57, %v312_v47 }
 0x39d   :  { %v315_v50 = vpop.f32.mrb[6].mxu1 }
 0x39e   :  { %327 = vrot.lane.b32.xlu0 %v325_v48, %s1983_s30  ;;  %v1730_v51 = vpop.f32.mrb[7].mxu1  ;;  %v321_v59 = vmul.f32 0.5, %v320_v58 }
 0x3a0   :  { %1896 = vtanh.f32 %v321_v59 }
 0x3a4   :  { %v1895_v52 = vpop.eup %1894 }
 0x3a5   :  { %v253_v53 = vmul.f32 0.5, %v1895_v52  ;;  %v1614_v52 = vld [vmem:[%s2416_s0 + $0x4] sm:$0x3] }
 0x3a7   :  { %v254_v55 = vadd.f32 0.5, %v253_v53 }
 0x3a9   :  { %v263_v56 = vmul.f32 %v261_v54, %v254_v55  ;;  %v270_v11 = vsub.f32 1.0, %v254_v55  ;;  %v276_v13 = vmul.f32 0.0, %v254_v55 }
 0x3aa   :  { %v1897_v60 = vpop.eup %1896 }
 0x3ab   :  { %265 = vrot.lane.b32.xlu1 %v263_v56, %s1986_s16  ;;  %v323_v61 = vmul.f32 0.5, %v1897_v60 }
 0x3ad   :  { %v324_v62 = vadd.f32 0.5, %v323_v61 }
 0x3af   :  { %v337_v17 = vsub.f32 1.0, %v324_v62  ;;  %v343_v19 = vmul.f32 %v324_v62, %v2095_v30 }
 0x410   :  { %v328_v63 = vpop.permute.xlu0 %327 }
 0x411   :  { %v330_v3 = vmul.f32 %v328_v63, %v324_v62 }
 0x413   :  { %332 = vrot.lane.b32.xlu0 %v330_v3, %s1983_s30 }
 0x41d   :  { %v266_v4 = vpop.permute.xlu1 %265 }
 0x41e   :  { %v268_v6 = vadd.f32 %v266_v4, %v196_v41 }
 0x420   :  { %1898 = vtanh.f32 %v268_v6 }
 0x42a   :  { %v1899_v7 = vpop.eup %1898 }
 0x42b   :  { %272 = vrot.lane.b32.xlu1 %v1899_v7, %s1987_s20 }
 0x485   :  { %v333_v8 = vpop.permute.xlu0 %332 }
 0x486   :  { %v335_v9 = vadd.f32 %v1610_v57, %v333_v8 }
 0x488   :  { %1900 = vtanh.f32 %v335_v9 }
 0x492   :  { %v1901_v10 = vpop.eup %1900 }
 0x493   :  { %339 = vrot.lane.b32.xlu0 %v1901_v10, %s1985_s4 }
 0x49d   :  { %v273_v12 = vpop.permute.xlu1 %272 }
 0x49e   :  { %v275_v14 = vmul.f32 %v273_v12, %v270_v11 }
 0x4a0   :  { %v2131_v15 = vadd.f32 %v276_v13, %v275_v14 }
 0x4a2   :  { %v392_v16 = vpack.c.bf16 %v2131_v15, %v2131_v15 }
 0x4a4   :  { %394 = vrot.lane.b32.xlu1 %v392_v16, %s1987_s20 }
 0x505   :  { %v340_v18 = vpop.permute.xlu0 %339 }
 0x506   :  { %v342_v20 = vmul.f32 %v340_v18, %v337_v17 }
 0x508   :  { %v2137_v24 = vadd.f32 %v343_v19, %v342_v20 }
 0x50a   :  { %v345_v25 = vpack.c.bf16 %v2137_v24, %v2137_v24 }
 0x50c   :  { %347 = vrot.lane.b32.xlu0 %v345_v25, %s1985_s4 }
 0x516   :  { %v395_v26 = vpop.permute.xlu1 %394 }
 0x517   :  { %1742 = vmatmul.mubr.msk.bf16.vlgmr.msra.gmra.mrb[8].mxu1 %vm207_vm2, %v395_v26 }
 0x518   :  { %1754 = vmatpush3.bf16.msra.mxu1 %v2071_v22  ;;  %1757 = vmatprep.mubr.msk.bf16.mxu1 %vm1982_vm0, %v1981_v1 }
 0x519   :  { %1755 = vmatprep.subr.bf16.mxu1 %v1981_v1 }
 0x51c   :  { %1756 = vmatpush3.bf16.msra.mxu1 %v2078_v23 }
 0x51d   :  { %1767 = vmatprep.subr.bf16.mxu1 %v1981_v1 }
 0x57e   :  { %v348_v27 = vpop.permute.xlu0 %347 }
 0x57f   :  { %1736 = vmatmul.mubr.msk.bf16.vlgmr.msra.gmra.mrb[8].mxu0 %vm69_vm1, %v348_v27 }
 0x580   :  { %1746 = vmatpush3.bf16.msra.mxu0 %v2032_v0  ;;  %1749 = vmatprep.mubr.msk.bf16.mxu0 %vm1982_vm0, %v1981_v1 }
 0x581   :  { %1747 = vmatprep.subr.bf16.mxu0 %v1981_v1 }
 0x584   :  { %1748 = vmatpush3.bf16.msra.mxu0 %v2040_v2 }
 0x585   :  { %1761 = vmatprep.subr.bf16.mxu0 %v1981_v1 }
 0x587   :  { %1750 = vmatmul.mubr.msk.bf16.vlgmr.msra.gmra.mrb[12].mxu0 %vm69_vm1, %v348_v27 }
 0x588   :  { %1762 = vmatpush3.bf16.msra.mxu0 %v2066_v21  ;;  %1763 = vmatprep.mubr.msk.bf16.mxu0 %vm1982_vm0, %v1981_v1 }
 0x589   :  { %1775 = vmatprep.subr.bf16.mxu0 %v1981_v1 }
 0x5ea   :  { %v433_v28 = vpop.f32.mrb[8].mxu1 }
 0x5eb   :  { %v444_v29 = vadd.f32 %v433_v28, %v2100_v36  ;;  %v1743_v30 = vpop.f32.mrb[9].mxu1 }
 0x5ec   :  { %v436_v31 = vpop.f32.mrb[10].mxu1 }
 0x5ed   :  { %446 = vrot.lane.b32.xlu1 %v444_v29, %s1985_s4  ;;  %v1744_v32 = vpop.f32.mrb[11].mxu1 }
 0x652   :  { %v386_v33 = vpop.f32.mrb[8].mxu0 }
 0x653   :  { %v387_v34 = vadd.f32 %v2119_v39, %v386_v33  ;;  %v1737_v35 = vpop.f32.mrb[9].mxu0 }
 0x654   :  { %v389_v37 = vpop.f32.mrb[10].mxu0 }
 0x655   :  { %v439_v38 = vadd.f32 %v433_v28, %v387_v34  ;;  %v1738_v40 = vpop.f32.mrb[11].mxu0 }
 0x657   :  { %v440_v41 = vmul.f32 0.5, %v439_v38 }
 0x659   :  { %1902 = vtanh.f32 %v440_v41 }
 0x65a   :  { %v498_v42 = vpop.f32.mrb[12].mxu0 }
 0x65b   :  { %v511_v43 = vadd.f32 %v498_v42, %v2055_v5  ;;  %v1751_v44 = vpop.f32.mrb[13].mxu0  ;;  %v506_v53 = vadd.f32 %v1614_v52, %v498_v42 }
 0x65c   :  { %v501_v45 = vpop.f32.mrb[14].mxu0 }
 0x65d   :  { %513 = vrot.lane.b32.xlu0 %v511_v43, %s1983_s30  ;;  %v1752_v46 = vpop.f32.mrb[15].mxu0  ;;  %v507_v54 = vmul.f32 0.5, %v506_v53 }
 0x65f   :  { %v447_v50 = vpop.permute.xlu1 %446  ;;  %1904 = vtanh.f32 %v507_v54 }
 0x663   :  { %v1903_v47 = vpop.eup %1902 }
 0x664   :  { %v442_v48 = vmul.f32 0.5, %v1903_v47  ;;  %v1618_v47 = vld [vmem:[%s2416_s0 + $0x6] sm:$0x3] }
 0x666   :  { %v443_v49 = vadd.f32 0.5, %v442_v48 }
 0x668   :  { %v449_v51 = vmul.f32 %v447_v50, %v443_v49  ;;  %v456_v6 = vsub.f32 1.0, %v443_v49  ;;  %v462_v8 = vmul.f32 %v443_v49, %v2131_v15 }
 0x669   :  { %v1905_v55 = vpop.eup %1904 }
 0x66a   :  { %451 = vrot.lane.b32.xlu1 %v449_v51, %s1986_s16  ;;  %v509_v56 = vmul.f32 0.5, %v1905_v55 }
 0x66c   :  { %v510_v57 = vadd.f32 0.5, %v509_v56 }
 0x66e   :  { %v523_v12 = vsub.f32 1.0, %v510_v57  ;;  %v529_v14 = vmul.f32 %v510_v57, %v2137_v24 }
 0x6cf   :  { %v514_v58 = vpop.permute.xlu0 %513 }
 0x6d0   :  { %v516_v59 = vmul.f32 %v514_v58, %v510_v57 }
 0x6d2   :  { %518 = vrot.lane.b32.xlu0 %v516_v59, %s1983_s30 }
 0x6dc   :  { %v452_v60 = vpop.permute.xlu1 %451 }
 0x6dd   :  { %v454_v61 = vadd.f32 %v452_v60, %v387_v34 }
 0x6df   :  { %1906 = vtanh.f32 %v454_v61 }
 0x6e9   :  { %v1907_v62 = vpop.eup %1906 }
 0x6ea   :  { %458 = vrot.lane.b32.xlu1 %v1907_v62, %s1987_s20 }
 0x744   :  { %v519_v63 = vpop.permute.xlu0 %518 }
 0x745   :  { %v521_v3 = vadd.f32 %v1614_v52, %v519_v63 }
 0x747   :  { %1908 = vtanh.f32 %v521_v3 }
 0x751   :  { %v1909_v4 = vpop.eup %1908 }
 0x752   :  { %525 = vrot.lane.b32.xlu0 %v1909_v4, %s1985_s4 }
 0x75c   :  { %v459_v7 = vpop.permute.xlu1 %458 }
 0x75d   :  { %v461_v9 = vmul.f32 %v459_v7, %v456_v6 }
 0x75f   :  { %v2174_v10 = vadd.f32 %v462_v8, %v461_v9 }
 0x761   :  { %v578_v11 = vpack.c.bf16 %v2174_v10, %v2174_v10 }
 0x763   :  { %580 = vrot.lane.b32.xlu1 %v578_v11, %s1987_s20 }
 0x7c4   :  { %v526_v13 = vpop.permute.xlu0 %525 }
 0x7c5   :  { %v528_v16 = vmul.f32 %v526_v13, %v523_v12 }
 0x7c7   :  { %v2180_v17 = vadd.f32 %v529_v14, %v528_v16 }
 0x7c9   :  { %v531_v18 = vpack.c.bf16 %v2180_v17, %v2180_v17 }
 0x7cb   :  { %533 = vrot.lane.b32.xlu0 %v531_v18, %s1985_s4 }
 0x7d5   :  { %v581_v15 = vpop.permute.xlu1 %580 }
 0x7d6   :  { %1764 = vmatmul.mubr.msk.bf16.vlgmr.msra.gmra.mrb[16].mxu0 %vm207_vm2, %v581_v15 }
 0x7d7   :  { %1776 = vmatpush3.bf16.msra.mxu0 %v2071_v22  ;;  %1779 = vmatprep.mubr.msk.bf16.mxu0 %vm1982_vm0, %v1981_v1 }
 0x7d8   :  { %1777 = vmatprep.subr.bf16.mxu0 %v1981_v1 }
 0x7db   :  { %1778 = vmatpush3.bf16.msra.mxu0 %v2078_v23 }
 0x7dc   :  { %1789 = vmatprep.subr.bf16.mxu0 %v1981_v1 }
 0x83d   :  { %v534_v19 = vpop.permute.xlu0 %533 }
 0x83e   :  { %1758 = vmatmul.mubr.msk.bf16.vlgmr.msra.gmra.mrb[12].mxu1 %vm69_vm1, %v534_v19 }
 0x83f   :  { %1768 = vmatpush3.bf16.msra.mxu1 %v2032_v0  ;;  %1771 = vmatprep.mubr.msk.bf16.mxu1 %vm1982_vm0, %v1981_v1 }
 0x840   :  { %1769 = vmatprep.subr.bf16.mxu1 %v1981_v1 }
 0x843   :  { %1770 = vmatpush3.bf16.msra.mxu1 %v2040_v2 }
 0x844   :  { %1783 = vmatprep.subr.bf16.mxu1 %v1981_v1 }
 0x846   :  { %1772 = vmatmul.mubr.msk.bf16.vlgmr.msra.gmra.mrb[16].mxu1 %vm69_vm1, %v534_v19 }
 0x847   :  { %1784 = vmatpush3.bf16.msra.mxu1 %v2066_v21  ;;  %1785 = vmatprep.mubr.msk.bf16.mxu1 %vm1982_vm0, %v1981_v1 }
 0x848   :  { %1797 = vmatprep.subr.bf16.mxu1 %v1981_v1 }
 0x8a9   :  { %v619_v20 = vpop.f32.mrb[16].mxu0 }
 0x8aa   :  { %v630_v24 = vadd.f32 %v619_v20, %v2100_v36  ;;  %v1765_v25 = vpop.f32.mrb[17].mxu0 }
 0x8ab   :  { %v622_v26 = vpop.f32.mrb[18].mxu0 }
 0x8ac   :  { %632 = vrot.lane.b32.xlu0 %v630_v24, %s1985_s4  ;;  %v1766_v27 = vpop.f32.mrb[19].mxu0 }
 0x911   :  { %v572_v28 = vpop.f32.mrb[12].mxu1 }
 0x912   :  { %v573_v29 = vadd.f32 %v2119_v39, %v572_v28  ;;  %v1759_v30 = vpop.f32.mrb[13].mxu1 }
 0x913   :  { %v575_v31 = vpop.f32.mrb[14].mxu1 }
 0x914   :  { %v625_v32 = vadd.f32 %v619_v20, %v573_v29  ;;  %v1760_v33 = vpop.f32.mrb[15].mxu1 }
 0x916   :  { %v626_v34 = vmul.f32 0.5, %v625_v32 }
 0x918   :  { %1910 = vtanh.f32 %v626_v34 }
 0x919   :  { %v684_v35 = vpop.f32.mrb[16].mxu1 }
 0x91a   :  { %v697_v37 = vadd.f32 %v684_v35, %v2055_v5  ;;  %v1773_v38 = vpop.f32.mrb[17].mxu1  ;;  %v692_v48 = vadd.f32 %v1618_v47, %v684_v35 }
 0x91b   :  { %v687_v40 = vpop.f32.mrb[18].mxu1 }
 0x91c   :  { %699 = vrot.lane.b32.xlu1 %v697_v37, %s1983_s30  ;;  %v1774_v41 = vpop.f32.mrb[19].mxu1  ;;  %v693_v49 = vmul.f32 0.5, %v692_v48 }
 0x91e   :  { %v633_v45 = vpop.permute.xlu0 %632  ;;  %1912 = vtanh.f32 %v693_v49 }
 0x922   :  { %v1911_v42 = vpop.eup %1910 }
 0x923   :  { %v628_v43 = vmul.f32 0.5, %v1911_v42  ;;  %v1622_v42 = vld [vmem:[%s2416_s0 + $0x8] sm:$0x3] }
 0x925   :  { %v629_v44 = vadd.f32 0.5, %v628_v43 }
 0x927   :  { %v635_v46 = vmul.f32 %v633_v45, %v629_v44  ;;  %v642_v61 = vsub.f32 1.0, %v629_v44  ;;  %v648_v63 = vmul.f32 %v629_v44, %v2174_v10 }
 0x928   :  { %v1913_v50 = vpop.eup %1912 }
 0x929   :  { %637 = vrot.lane.b32.xlu0 %v635_v46, %s1986_s16  ;;  %v695_v51 = vmul.f32 0.5, %v1913_v50 }
 0x92b   :  { %v696_v52 = vadd.f32 0.5, %v695_v51 }
 0x92d   :  { %v709_v7 = vsub.f32 1.0, %v696_v52  ;;  %v715_v9 = vmul.f32 %v696_v52, %v2180_v17 }
 0x98e   :  { %v700_v53 = vpop.permute.xlu1 %699 }
 0x98f   :  { %v702_v54 = vmul.f32 %v700_v53, %v696_v52 }
 0x991   :  { %704 = vrot.lane.b32.xlu1 %v702_v54, %s1983_s30 }
 0x99b   :  { %v638_v55 = vpop.permute.xlu0 %637 }
 0x99c   :  { %v640_v56 = vadd.f32 %v638_v55, %v573_v29 }
 0x99e   :  { %1914 = vtanh.f32 %v640_v56 }
 0x9a8   :  { %v1915_v57 = vpop.eup %1914 }
 0x9a9   :  { %644 = vrot.lane.b32.xlu0 %v1915_v57, %s1987_s20 }
 0xa03   :  { %v705_v58 = vpop.permute.xlu1 %704 }
 0xa04   :  { %v707_v59 = vadd.f32 %v1618_v47, %v705_v58 }
 0xa06   :  { %1916 = vtanh.f32 %v707_v59 }
 0xa10   :  { %v1917_v60 = vpop.eup %1916 }
 0xa11   :  { %711 = vrot.lane.b32.xlu1 %v1917_v60, %s1985_s4 }
 0xa1b   :  { %v645_v62 = vpop.permute.xlu0 %644 }
 0xa1c   :  { %v647_v3 = vmul.f32 %v645_v62, %v642_v61 }
 0xa1e   :  { %v2217_v4 = vadd.f32 %v648_v63, %v647_v3 }
 0xa20   :  { %v764_v6 = vpack.c.bf16 %v2217_v4, %v2217_v4 }
 0xa22   :  { %766 = vrot.lane.b32.xlu0 %v764_v6, %s1987_s20 }
 0xa83   :  { %v712_v8 = vpop.permute.xlu1 %711 }
 0xa84   :  { %v714_v11 = vmul.f32 %v712_v8, %v709_v7 }
 0xa86   :  { %v2223_v12 = vadd.f32 %v715_v9, %v714_v11 }
 0xa88   :  { %v717_v13 = vpack.c.bf16 %v2223_v12, %v2223_v12 }
 0xa8a   :  { %719 = vrot.lane.b32.xlu1 %v717_v13, %s1985_s4 }
 0xa94   :  { %v767_v10 = vpop.permute.xlu0 %766 }
 0xa95   :  { %1786 = vmatmul.mubr.msk.bf16.vlgmr.msra.gmra.mrb[20].mxu1 %vm207_vm2, %v767_v10 }
 0xa96   :  { %1798 = vmatpush3.bf16.msra.mxu1 %v2071_v22  ;;  %1801 = vmatprep.mubr.msk.bf16.mxu1 %vm1982_vm0, %v1981_v1 }
 0xa97   :  { %1799 = vmatprep.subr.bf16.mxu1 %v1981_v1 }
 0xa9a   :  { %1800 = vmatpush3.bf16.msra.mxu1 %v2078_v23 }
 0xa9b   :  { %1811 = vmatprep.subr.bf16.mxu1 %v1981_v1 }
 0xafc   :  { %v720_v14 = vpop.permute.xlu1 %719 }
 0xafd   :  { %1780 = vmatmul.mubr.msk.bf16.vlgmr.msra.gmra.mrb[20].mxu0 %vm69_vm1, %v720_v14 }
 0xafe   :  { %1790 = vmatpush3.bf16.msra.mxu0 %v2032_v0  ;;  %1793 = vmatprep.mubr.msk.bf16.mxu0 %vm1982_vm0, %v1981_v1 }
 0xaff   :  { %1791 = vmatprep.subr.bf16.mxu0 %v1981_v1 }
 0xb02   :  { %1792 = vmatpush3.bf16.msra.mxu0 %v2040_v2 }
 0xb03   :  { %1805 = vmatprep.subr.bf16.mxu0 %v1981_v1 }
 0xb05   :  { %1794 = vmatmul.mubr.msk.bf16.vlgmr.msra.gmra.mrb[24].mxu0 %vm69_vm1, %v720_v14 }
 0xb06   :  { %1806 = vmatpush3.bf16.msra.mxu0 %v2066_v21  ;;  %1807 = vmatprep.mubr.msk.bf16.mxu0 %vm1982_vm0, %v1981_v1 }
 0xb07   :  { %1819 = vmatprep.subr.bf16.mxu0 %v1981_v1 }
 0xb68   :  { %v805_v16 = vpop.f32.mrb[20].mxu1 }
 0xb69   :  { %v816_v17 = vadd.f32 %v805_v16, %v2100_v36  ;;  %v1787_v18 = vpop.f32.mrb[21].mxu1 }
 0xb6a   :  { %v808_v15 = vpop.f32.mrb[22].mxu1 }
 0xb6b   :  { %818 = vrot.lane.b32.xlu0 %v816_v17, %s1985_s4  ;;  %v1788_v19 = vpop.f32.mrb[23].mxu1 }
 0xbd0   :  { %v758_v20 = vpop.f32.mrb[20].mxu0 }
 0xbd1   :  { %v759_v24 = vadd.f32 %v2119_v39, %v758_v20  ;;  %v1781_v25 = vpop.f32.mrb[21].mxu0 }
 0xbd2   :  { %v761_v26 = vpop.f32.mrb[22].mxu0 }
 0xbd3   :  { %v811_v27 = vadd.f32 %v805_v16, %v759_v24  ;;  %v1782_v28 = vpop.f32.mrb[23].mxu0 }
 0xbd5   :  { %v812_v29 = vmul.f32 0.5, %v811_v27 }
 0xbd7   :  { %1918 = vtanh.f32 %v812_v29 }
 0xbd8   :  { %v870_v30 = vpop.f32.mrb[24].mxu0 }
 0xbd9   :  { %v883_v31 = vadd.f32 %v870_v30, %v2055_v5  ;;  %v1795_v32 = vpop.f32.mrb[25].mxu0  ;;  %v878_v43 = vadd.f32 %v1622_v42, %v870_v30 }
 0xbda   :  { %v873_v33 = vpop.f32.mrb[26].mxu0 }
 0xbdb   :  { %885 = vrot.lane.b32.xlu1 %v883_v31, %s1983_s30  ;;  %v1796_v34 = vpop.f32.mrb[27].mxu0  ;;  %v879_v44 = vmul.f32 0.5, %v878_v43 }
 0xbdd   :  { %v819_v40 = vpop.permute.xlu0 %818  ;;  %1920 = vtanh.f32 %v879_v44 }
 0xbe1   :  { %v1919_v35 = vpop.eup %1918 }
 0xbe2   :  { %v814_v37 = vmul.f32 0.5, %v1919_v35  ;;  %v1626_v35 = vld [vmem:[%s2416_s0 + $0xa] sm:$0x3] }
 0xbe4   :  { %v815_v38 = vadd.f32 0.5, %v814_v37 }
 0xbe6   :  { %v821_v41 = vmul.f32 %v819_v40, %v815_v38  ;;  %v828_v56 = vsub.f32 1.0, %v815_v38  ;;  %v834_v58 = vmul.f32 %v815_v38, %v2217_v4 }
 0xbe7   :  { %v1921_v45 = vpop.eup %1920 }
 0xbe8   :  { %823 = vrot.lane.b32.xlu0 %v821_v41, %s1986_s16  ;;  %v881_v46 = vmul.f32 0.5, %v1921_v45 }
 0xbea   :  { %v882_v47 = vadd.f32 0.5, %v881_v46 }
 0xbec   :  { %v895_v62 = vsub.f32 1.0, %v882_v47  ;;  %v901_v3 = vmul.f32 %v882_v47, %v2223_v12 }
 0xc4d   :  { %v886_v48 = vpop.permute.xlu1 %885 }
 0xc4e   :  { %v888_v49 = vmul.f32 %v886_v48, %v882_v47 }
 0xc50   :  { %890 = vrot.lane.b32.xlu1 %v888_v49, %s1983_s30 }
 0xc5a   :  { %v824_v50 = vpop.permute.xlu0 %823 }
 0xc5b   :  { %v826_v51 = vadd.f32 %v824_v50, %v759_v24 }
 0xc5d   :  { %1922 = vtanh.f32 %v826_v51 }
 0xc67   :  { %v1923_v52 = vpop.eup %1922 }
 0xc68   :  { %830 = vrot.lane.b32.xlu0 %v1923_v52, %s1987_s20 }
 0xcc2   :  { %v891_v53 = vpop.permute.xlu1 %890 }
 0xcc3   :  { %v893_v54 = vadd.f32 %v1622_v42, %v891_v53 }
 0xcc5   :  { %1924 = vtanh.f32 %v893_v54 }
 0xccf   :  { %v1925_v55 = vpop.eup %1924 }
 0xcd0   :  { %897 = vrot.lane.b32.xlu1 %v1925_v55, %s1985_s4 }
 0xcda   :  { %v831_v57 = vpop.permute.xlu0 %830 }
 0xcdb   :  { %v833_v59 = vmul.f32 %v831_v57, %v828_v56 }
 0xcdd   :  { %v2260_v60 = vadd.f32 %v834_v58, %v833_v59 }
 0xcdf   :  { %v950_v61 = vpack.c.bf16 %v2260_v60, %v2260_v60 }
 0xce1   :  { %952 = vrot.lane.b32.xlu0 %v950_v61, %s1987_s20 }
 0xd42   :  { %v898_v63 = vpop.permute.xlu1 %897 }
 0xd43   :  { %v900_v6 = vmul.f32 %v898_v63, %v895_v62 }
 0xd45   :  { %v2266_v7 = vadd.f32 %v901_v3, %v900_v6 }
 0xd47   :  { %v903_v8 = vpack.c.bf16 %v2266_v7, %v2266_v7 }
 0xd49   :  { %905 = vrot.lane.b32.xlu1 %v903_v8, %s1985_s4 }
 0xd53   :  { %v953_v4 = vpop.permute.xlu0 %952 }
 0xd54   :  { %1808 = vmatmul.mubr.msk.bf16.vlgmr.msra.gmra.mrb[28].mxu0 %vm207_vm2, %v953_v4 }
 0xd55   :  { %1820 = vmatpush3.bf16.msra.mxu0 %v2071_v22  ;;  %1823 = vmatprep.mubr.msk.bf16.mxu0 %vm1982_vm0, %v1981_v1 }
 0xd56   :  { %1821 = vmatprep.subr.bf16.mxu0 %v1981_v1 }
 0xd59   :  { %1822 = vmatpush3.bf16.msra.mxu0 %v2078_v23 }
 0xd5a   :  { %1833 = vmatprep.subr.bf16.mxu0 %v1981_v1 }
 0xdbb   :  { %v906_v9 = vpop.permute.xlu1 %905 }
 0xdbc   :  { %1802 = vmatmul.mubr.msk.bf16.vlgmr.msra.gmra.mrb[24].mxu1 %vm69_vm1, %v906_v9 }
 0xdbd   :  { %1812 = vmatpush3.bf16.msra.mxu1 %v2032_v0  ;;  %1815 = vmatprep.mubr.msk.bf16.mxu1 %vm1982_vm0, %v1981_v1 }
 0xdbe   :  { %1813 = vmatprep.subr.bf16.mxu1 %v1981_v1 }
 0xdc1   :  { %1814 = vmatpush3.bf16.msra.mxu1 %v2040_v2 }
 0xdc2   :  { %1827 = vmatprep.subr.bf16.mxu1 %v1981_v1 }
 0xdc4   :  { %1816 = vmatmul.mubr.msk.bf16.vlgmr.msra.gmra.mrb[28].mxu1 %vm69_vm1, %v906_v9 }
 0xdc5   :  { %1828 = vmatpush3.bf16.msra.mxu1 %v2066_v21  ;;  %1829 = vmatprep.mubr.msk.bf16.mxu1 %vm1982_vm0, %v1981_v1 }
 0xdc6   :  { %1841 = vmatprep.subr.bf16.mxu1 %v1981_v1 }
 0xe27   :  { %v991_v11 = vpop.f32.mrb[28].mxu0 }
 0xe28   :  { %v1002_v12 = vadd.f32 %v991_v11, %v2100_v36  ;;  %v1809_v13 = vpop.f32.mrb[29].mxu0 }
 0xe29   :  { %v994_v10 = vpop.f32.mrb[30].mxu0 }
 0xe2a   :  { %1004 = vrot.lane.b32.xlu0 %v1002_v12, %s1985_s4  ;;  %v1810_v14 = vpop.f32.mrb[31].mxu0 }
 0xe8f   :  { %v944_v16 = vpop.f32.mrb[24].mxu1 }
 0xe90   :  { %v945_v17 = vadd.f32 %v2119_v39, %v944_v16  ;;  %v1803_v18 = vpop.f32.mrb[25].mxu1 }
 0xe91   :  { %v947_v15 = vpop.f32.mrb[26].mxu1 }
 0xe92   :  { %v997_v19 = vadd.f32 %v991_v11, %v945_v17  ;;  %v1804_v20 = vpop.f32.mrb[27].mxu1 }
 0xe94   :  { %v998_v24 = vmul.f32 0.5, %v997_v19 }
 0xe96   :  { %1926 = vtanh.f32 %v998_v24 }
 0xe97   :  { %v1056_v25 = vpop.f32.mrb[28].mxu1 }
 0xe98   :  { %v1069_v26 = vadd.f32 %v1056_v25, %v2055_v5  ;;  %v1817_v27 = vpop.f32.mrb[29].mxu1  ;;  %v1064_v37 = vadd.f32 %v1626_v35, %v1056_v25 }
 0xe99   :  { %v1059_v28 = vpop.f32.mrb[30].mxu1 }
 0xe9a   :  { %1071 = vrot.lane.b32.xlu1 %v1069_v26, %s1983_s30  ;;  %v1818_v29 = vpop.f32.mrb[31].mxu1  ;;  %v1065_v38 = vmul.f32 0.5, %v1064_v37  ;;  %v1630_v28 = vld [vmem:[%s2416_s0 + $0xc] sm:$0x3] }
 0xe9c   :  { %v1005_v33 = vpop.permute.xlu0 %1004  ;;  %1928 = vtanh.f32 %v1065_v38 }
 0xea0   :  { %v1927_v30 = vpop.eup %1926 }
 0xea1   :  { %v1000_v31 = vmul.f32 0.5, %v1927_v30 }
 0xea3   :  { %v1001_v32 = vadd.f32 0.5, %v1000_v31 }
 0xea5   :  { %v1007_v34 = vmul.f32 %v1005_v33, %v1001_v32  ;;  %v1014_v51 = vsub.f32 1.0, %v1001_v32  ;;  %v1020_v53 = vmul.f32 %v1001_v32, %v2260_v60 }
 0xea6   :  { %v1929_v40 = vpop.eup %1928 }
 0xea7   :  { %1009 = vrot.lane.b32.xlu0 %v1007_v34, %s1986_s16  ;;  %v1067_v41 = vmul.f32 0.5, %v1929_v40 }
 0xea9   :  { %v1068_v42 = vadd.f32 0.5, %v1067_v41 }
 0xeab   :  { %v1081_v57 = vsub.f32 1.0, %v1068_v42  ;;  %v1087_v59 = vmul.f32 %v1068_v42, %v2266_v7 }
 0xf0c   :  { %v1072_v43 = vpop.permute.xlu1 %1071 }
 0xf0d   :  { %v1074_v44 = vmul.f32 %v1072_v43, %v1068_v42 }
 0xf0f   :  { %1076 = vrot.lane.b32.xlu1 %v1074_v44, %s1983_s30 }
 0xf19   :  { %v1010_v45 = vpop.permute.xlu0 %1009 }
 0xf1a   :  { %v1012_v46 = vadd.f32 %v1010_v45, %v945_v17 }
 0xf1c   :  { %1930 = vtanh.f32 %v1012_v46 }
 0xf26   :  { %v1931_v47 = vpop.eup %1930 }
 0xf27   :  { %1016 = vrot.lane.b32.xlu0 %v1931_v47, %s1987_s20 }
 0xf81   :  { %v1077_v48 = vpop.permute.xlu1 %1076 }
 0xf82   :  { %v1079_v49 = vadd.f32 %v1626_v35, %v1077_v48 }
 0xf84   :  { %1932 = vtanh.f32 %v1079_v49 }
 0xf8e   :  { %v1933_v50 = vpop.eup %1932 }
 0xf8f   :  { %1083 = vrot.lane.b32.xlu1 %v1933_v50, %s1985_s4 }
 0xf99   :  { %v1017_v52 = vpop.permute.xlu0 %1016 }
 0xf9a   :  { %v1019_v54 = vmul.f32 %v1017_v52, %v1014_v51 }
 0xf9c   :  { %v2303_v55 = vadd.f32 %v1020_v53, %v1019_v54 }
 0xf9e   :  { %v1136_v56 = vpack.c.bf16 %v2303_v55, %v2303_v55 }
 0xfa0   :  { %1138 = vrot.lane.b32.xlu0 %v1136_v56, %s1987_s20 }
0x1001   :  { %v1084_v58 = vpop.permute.xlu1 %1083 }
0x1002   :  { %v1086_v61 = vmul.f32 %v1084_v58, %v1081_v57  ;;  %v1954_v58 = vld [vmem:[%s2417_s1] sm:$0xff]  }
0x1004   :  { %v2309_v62 = vadd.f32 %v1087_v59, %v1086_v61 }
0x1006   :  { %v1089_v63 = vpack.c.bf16 %v2309_v62, %v2309_v62 }
0x1008   :  { %1091 = vrot.lane.b32.xlu1 %v1089_v63, %s1985_s4 }
0x1012   :  { %v1139_v60 = vpop.permute.xlu0 %1138 }
0x1013   :  { %1830 = vmatmul.mubr.msk.bf16.vlgmr.msra.gmra.mrb[32].mxu1 %vm207_vm2, %v1139_v60 }
0x1014   :  { %1842 = vmatpush3.bf16.msra.mxu1 %v2071_v22  ;;  %1845 = vmatprep.mubr.msk.bf16.mxu1 %vm1982_vm0, %v1981_v1 }
0x1015   :  { %1843 = vmatprep.subr.bf16.mxu1 %v1981_v1 }
0x1018   :  { %1844 = vmatpush3.bf16.msra.mxu1 %v2078_v23 }
0x1019   :  { %1855 = vmatprep.subr.bf16.mxu1 %v1981_v1 }
0x107a   :  { %v1092_v3 = vpop.permute.xlu1 %1091 }
0x107b   :  { %1824 = vmatmul.mubr.msk.bf16.vlgmr.msra.gmra.mrb[32].mxu0 %vm69_vm1, %v1092_v3 }
0x107c   :  { %1834 = vmatpush3.bf16.msra.mxu0 %v2032_v0  ;;  %1837 = vmatprep.mubr.msk.bf16.mxu0 %vm1982_vm0, %v1981_v1 }
0x107d   :  { %1835 = vmatprep.subr.bf16.mxu0 %v1981_v1 }
0x1080   :  { %1836 = vmatpush3.bf16.msra.mxu0 %v2040_v2 }
0x1081   :  { %1849 = vmatprep.subr.bf16.mxu0 %v1981_v1 }
0x1083   :  { %1838 = vmatmul.mubr.msk.bf16.vlgmr.msra.gmra.mrb[36].mxu0 %vm69_vm1, %v1092_v3 }
0x1084   :  { %1850 = vmatpush3.bf16.msra.mxu0 %v2066_v21  ;;  %1851 = vmatprep.mubr.msk.bf16.mxu0 %vm1982_vm0, %v1981_v1 }
0x1085   :  { %1863 = vmatprep.subr.bf16.mxu0 %v1981_v1 }
0x10e6   :  { %v1177_v6 = vpop.f32.mrb[32].mxu1 }
0x10e7   :  { %v1188_v0 = vadd.f32 %v1177_v6, %v2100_v36  ;;  %v1831_v7 = vpop.f32.mrb[33].mxu1 }
0x10e8   :  { %v1180_v8 = vpop.f32.mrb[34].mxu1 }
0x10e9   :  { %1190 = vrot.lane.b32.xlu0 %v1188_v0, %s1985_s4  ;;  %v1832_v4 = vpop.f32.mrb[35].mxu1 }
0x114e   :  { %v1130_v2 = vpop.f32.mrb[32].mxu0 }
0x114f   :  { %v1131_v9 = vadd.f32 %v2119_v39, %v1130_v2  ;;  %v1825_v11 = vpop.f32.mrb[33].mxu0 }
0x1150   :  { %v1133_v12 = vpop.f32.mrb[34].mxu0 }
0x1151   :  { %v1183_v13 = vadd.f32 %v1177_v6, %v1131_v9  ;;  %v1826_v10 = vpop.f32.mrb[35].mxu0 }
0x1153   :  { %v1184_v14 = vmul.f32 0.5, %v1183_v13 }
0x1155   :  { %1934 = vtanh.f32 %v1184_v14 }
0x1156   :  { %v1242_v16 = vpop.f32.mrb[36].mxu0 }
0x1157   :  { %v1255_v17 = vadd.f32 %v1242_v16, %v2055_v5  ;;  %v1839_v18 = vpop.f32.mrb[37].mxu0  ;;  %v1250_v29 = vadd.f32 %v1630_v28, %v1242_v16 }
0x1158   :  { %v1245_v15 = vpop.f32.mrb[38].mxu0 }
0x1159   :  { %1257 = vrot.lane.b32.xlu1 %v1255_v17, %s1983_s30  ;;  %v1840_v19 = vpop.f32.mrb[39].mxu0  ;;  %v1251_v30 = vmul.f32 0.5, %v1250_v29 }
0x115b   :  { %v1191_v26 = vpop.permute.xlu0 %1190  ;;  %1936 = vtanh.f32 %v1251_v30 }
0x115f   :  { %v1935_v20 = vpop.eup %1934 }
0x1160   :  { %v1186_v24 = vmul.f32 0.5, %v1935_v20 }
0x1162   :  { %v1187_v25 = vadd.f32 0.5, %v1186_v24 }
0x1164   :  { %v1193_v27 = vmul.f32 %v1191_v26, %v1187_v25  ;;  %v1200_v44 = vsub.f32 1.0, %v1187_v25  ;;  %v1206_v46 = vmul.f32 %v1187_v25, %v2303_v55 }
0x1165   :  { %v1937_v31 = vpop.eup %1936 }
0x1166   :  { %1195 = vrot.lane.b32.xlu0 %v1193_v27, %s1986_s16  ;;  %v1253_v32 = vmul.f32 0.5, %v1937_v31 }
0x1168   :  { %v1254_v33 = vadd.f32 0.5, %v1253_v32 }
0x116a   :  { %v1267_v50 = vsub.f32 1.0, %v1254_v33  ;;  %v1273_v52 = vmul.f32 %v1254_v33, %v2309_v62 }
0x11cb   :  { %v1258_v34 = vpop.permute.xlu1 %1257 }
0x11cc   :  { %v1260_v35 = vmul.f32 %v1258_v34, %v1254_v33 }
0x11ce   :  { %1262 = vrot.lane.b32.xlu1 %v1260_v35, %s1983_s30 }
0x11d8   :  { %v1196_v37 = vpop.permute.xlu0 %1195 }
0x11d9   :  { %v1198_v38 = vadd.f32 %v1196_v37, %v1131_v9 }
0x11db   :  { %1938 = vtanh.f32 %v1198_v38 }
0x11e5   :  { %v1939_v40 = vpop.eup %1938 }
0x11e6   :  { %1202 = vrot.lane.b32.xlu0 %v1939_v40, %s1987_s20 }
0x1240   :  { %v1263_v41 = vpop.permute.xlu1 %1262 }
0x1241   :  { %v1265_v42 = vadd.f32 %v1630_v28, %v1263_v41 }
0x1243   :  { %1940 = vtanh.f32 %v1265_v42 }
0x124d   :  { %v1941_v43 = vpop.eup %1940 }
0x124e   :  { %1269 = vrot.lane.b32.xlu1 %v1941_v43, %s1985_s4 }
0x1258   :  { %v1203_v45 = vpop.permute.xlu0 %1202 }
0x1259   :  { %v1205_v47 = vmul.f32 %v1203_v45, %v1200_v44 }
0x125b   :  { %v2346_v48 = vadd.f32 %v1206_v46, %v1205_v47 }
0x125d   :  { %v1322_v49 = vpack.c.bf16 %v2346_v48, %v2346_v48 }
0x125f   :  { %1324 = vrot.lane.b32.xlu0 %v1322_v49, %s1987_s20 }
0x12c0   :  { %v1270_v51 = vpop.permute.xlu1 %1269 }
0x12c1   :  { %v1272_v53 = vmul.f32 %v1270_v51, %v1267_v50 }
0x12c3   :  { %v2352_v54 = vadd.f32 %v1273_v52, %v1272_v53  ;;  %v1956_v53 = vld [vmem:[%s2421_s5] ss:$0 sm:$0xff]  ;;  %s1988_s5 = smov [#allocation2]  }
0x12c4   :  { %s1592_s13 = sshll.u32 %s1988_s5, 4  ;;  %s1593_s13 = int_to_ptr.vmem [resolvable:$true] %s1592_s13 }
0x12c5   :  { %v1275_v56 = vpack.c.bf16 %v2352_v54, %v2352_v54  ;;  %s1957_s14 = scalar_lea.vmem %s1593_s13, 32  ;;  %p1962_p1 = scmp.lt.s32.totalorder %s1593_s13, %s1593_s13 }
0x12c6   :  { %p1958_p0 = scmp.ne.s32.totalorder %s1593_s13, %s1957_s14  ;;  %p1963_p2 = scmp.lt.s32.totalorder %s1957_s14, %s1957_s14 }
0x12c7   :  { %1277 = vrot.lane.b32.xlu1 %v1275_v56, %s1985_s4 }
0x12c8   :  { %p1964_p3 = por %p1963_p2, %p1962_p1 }
0x12ca   :  { %p1965_p4 = pnand %p1964_p3, %p1958_p0 }
0x12d1   :  { %v1325_v55 = vpop.permute.xlu0 %1324 }
0x12d2   :  { %1852 = vmatmul.mubr.msk.bf16.vlgmr.msra.gmra.mrb[40].mxu0 %vm207_vm2, %v1325_v55 }
0x12d3   :  { %1864 = vmatpush3.bf16.msra.mxu0 %v2071_v22  ;;  %1867 = vmatprep.mubr.msk.bf16.mxu0 %vm1982_vm0, %v1981_v1  ;;  %v1955_v22 = vld [vmem:[%s2417_s1 + $0x8] sm:$0xff]  }
0x12d4   :  { %1865 = vmatprep.subr.bf16.mxu0 %v1981_v1 }
0x12d7   :  { %1866 = vmatpush3.bf16.msra.mxu0 %v2078_v23 }
0x1339   :  { %v1278_v57 = vpop.permute.xlu1 %1277 }
0x133a   :  { %1846 = vmatmul.mubr.msk.bf16.vlgmr.msra.gmra.mrb[36].mxu1 %vm69_vm1, %v1278_v57 }
0x133b   :  { %1856 = vmatpush3.bf16.msra.mxu1 %v1954_v58  ;;  %1859 = vmatprep.mubr.msk.bf16.mxu1 %vm1982_vm0, %v1981_v1 }
0x133c   :  { %1857 = vmatprep.subr.bf16.mxu1 %v1981_v1 }
0x133f   :  { %1858 = vmatpush3.bf16.msra.mxu1 %v1955_v22 }
0x1340   :  { %1871 = vmatprep.subr.bf16.mxu1 %v1981_v1 }
0x1342   :  { %1860 = vmatmul.mubr.msk.bf16.vlgmr.msra.gmra.mrb[40].mxu1 %vm69_vm1, %v1278_v57 }
0x1343   :  { %1872 = vmatpush3.bf16.msra.mxu1 %v2066_v21  ;;  %1873 = vmatprep.mubr.msk.bf16.mxu1 %vm1982_vm0, %v1981_v1 }
0x13a5   :  { %v1363_v23 = vpop.f32.mrb[40].mxu0 }
0x13a6   :  { %v1374_v59 = vadd.f32 %v1363_v23, %v2100_v36  ;;  %v1853_v61 = vpop.f32.mrb[41].mxu0 }
0x13a7   :  { %v1366_v62 = vpop.f32.mrb[42].mxu0 }
0x13a8   :  { %1376 = vrot.lane.b32.xlu0 %v1374_v59, %s1985_s4  ;;  %v1854_v63 = vpop.f32.mrb[43].mxu0 }
0x140d   :  { %v1316_v60 = vpop.f32.mrb[36].mxu1 }
0x140e   :  { %v1317_v3 = vadd.f32 %v2119_v39, %v1316_v60  ;;  %v1847_v6 = vpop.f32.mrb[37].mxu1  ;;  %v1634_v39 = vld [vmem:[%s2416_s0 + $0xe] sm:$0x3] }
0x140f   :  { %v1319_v0 = vpop.f32.mrb[38].mxu1 }
0x1410   :  { %v1369_v7 = vadd.f32 %v1363_v23, %v1317_v3  ;;  %v1848_v8 = vpop.f32.mrb[39].mxu1 }
0x1412   :  { %v1370_v4 = vmul.f32 0.5, %v1369_v7 }
0x1414   :  { %1942 = vtanh.f32 %v1370_v4 }
0x1415   :  { %v1428_v21 = vpop.f32.mrb[40].mxu1 }
0x1416   :  { %v1441_v1 = vadd.f32 %v1428_v21, %v2055_v5  ;;  %v1861_v2 = vpop.f32.mrb[41].mxu1  ;;  %v1436_v17 = vadd.f32 %v1634_v39, %v1428_v21 }
0x1417   :  { %v1431_v9 = vpop.f32.mrb[42].mxu1 }
0x1418   :  { %1443 = vrot.lane.b32.xlu1 %v1441_v1, %s1983_s30  ;;  %v1862_v11 = vpop.f32.mrb[43].mxu1  ;;  %v1437_v18 = vmul.f32 0.5, %v1436_v17 }
0x141a   :  { %v1377_v14 = vpop.permute.xlu0 %1376  ;;  %1944 = vtanh.f32 %v1437_v18 }
0x141e   :  { %v1943_v12 = vpop.eup %1942 }
0x141f   :  { %v1372_v13 = vmul.f32 0.5, %v1943_v12 }
0x1421   :  { %v1373_v10 = vadd.f32 0.5, %v1372_v13 }
0x1423   :  { %v1379_v16 = vmul.f32 %v1377_v14, %v1373_v10  ;;  %v1386_v31 = vsub.f32 1.0, %v1373_v10  ;;  %v1392_v33 = vmul.f32 %v1373_v10, %v2346_v48 }
0x1424   :  { %v1945_v5 = vpop.eup %1944 }
0x1425   :  { %1381 = vrot.lane.b32.xlu0 %v1379_v16, %s1986_s16  ;;  %v1439_v15 = vmul.f32 0.5, %v1945_v5 }
0x1427   :  { %v1440_v19 = vadd.f32 0.5, %v1439_v15 }
0x1429   :  { %v1453_v38 = vsub.f32 1.0, %v1440_v19  ;;  %v1459_v41 = vmul.f32 %v1440_v19, %v2352_v54 }
0x148a   :  { %v1444_v20 = vpop.permute.xlu1 %1443 }
0x148b   :  { %v1446_v24 = vmul.f32 %v1444_v20, %v1440_v19 }
0x148d   :  { %1448 = vrot.lane.b32.xlu1 %v1446_v24, %s1983_s30 }
0x1497   :  { %v1382_v25 = vpop.permute.xlu0 %1381 }
0x1498   :  { %v1384_v26 = vadd.f32 %v1382_v25, %v1317_v3 }
0x149a   :  { %1946 = vtanh.f32 %v1384_v26 }
0x14a4   :  { %v1947_v27 = vpop.eup %1946 }
0x14a5   :  { %1388 = vrot.lane.b32.xlu0 %v1947_v27, %s1987_s20 }
0x14ff   :  { %v1449_v28 = vpop.permute.xlu1 %1448 }
0x1500   :  { %v1451_v29 = vadd.f32 %v1634_v39, %v1449_v28 }
0x1502   :  { %1948 = vtanh.f32 %v1451_v29 }
0x150c   :  { %v1949_v30 = vpop.eup %1948 }
0x150d   :  { %1455 = vrot.lane.b32.xlu1 %v1949_v30, %s1985_s4 }
0x1517   :  { %v1389_v32 = vpop.permute.xlu0 %1388 }
0x1518   :  { %v1391_v34 = vmul.f32 %v1389_v32, %v1386_v31 }
0x151a   :  { %v1393_v35 = vadd.f32 %v1392_v33, %v1391_v34 }
0x151c   :  { %v1508_v37 = vpack.c.bf16 %v1393_v35, %v1393_v35 }
0x151e   :  { %1510 = vrot.lane.b32.xlu0 %v1508_v37, %s1987_s20 }
0x157f   :  { %v1456_v40 = vpop.permute.xlu1 %1455 }
0x1580   :  { %v1458_v42 = vmul.f32 %v1456_v40, %v1453_v38 }
0x1582   :  { %v1460_v43 = vadd.f32 %v1459_v41, %v1458_v42 }
0x1584   :  { %v1461_v44 = vpack.c.bf16 %v1460_v43, %v1460_v43 }
0x1586   :  { %1463 = vrot.lane.b32.xlu1 %v1461_v44, %s1985_s4 }
0x1590   :  { %v1511_v45 = vpop.permute.xlu0 %1510 }
0x1591   :  { %1874 = vmatmul.mubr.msk.bf16.vlgmr.msra.gmra.mrb[44].mxu1 %vm207_vm2, %v1511_v45 }
0x15f8   :  { %v1464_v46 = vpop.permute.xlu1 %1463 }
0x15f9   :  { %1868 = vmatmul.mubr.msk.bf16.vlgmr.msra.gmra.mrb[44].mxu0 %vm69_vm1, %v1464_v46 }
0x1664   :  { %v1549_v47 = vpop.f32.mrb[44].mxu1 }
0x1665   :  { %v1560_v48 = vadd.f32 %v1549_v47, %v2100_v36  ;;  %v1875_v49 = vpop.f32.mrb[45].mxu1 }
0x1666   :  { %v1552_v50 = vpop.f32.mrb[46].mxu1 }
0x1667   :  { %1562 = vrot.lane.b32.xlu0 %v1560_v48, %s1985_s4  ;;  %v1876_v51 = vpop.f32.mrb[47].mxu1 }
0x16cc   :  { %v1502_v52 = vpop.f32.mrb[44].mxu0 }
0x16cd   :  { %v1503_v54 = vadd.f32 %v1956_v53, %v1502_v52  ;;  %v1869_v56 = vpop.f32.mrb[45].mxu0 }
0x16ce   :  { %v1505_v55 = vpop.f32.mrb[46].mxu0 }
0x16cf   :  { %v1555_v57 = vadd.f32 %v1549_v47, %v1503_v54  ;;  %v1870_v58 = vpop.f32.mrb[47].mxu0 }
0x16d1   :  { %v1556_v22 = vmul.f32 0.5, %v1555_v57 }
0x16d3   :  { %1950 = vtanh.f32 %v1556_v22 }
0x16d9   :  { %v1563_v61 = vpop.permute.xlu0 %1562 }
0x16dd   :  { %v1951_v23 = vpop.eup %1950 }
0x16de   :  { %v1558_v59 = vmul.f32 0.5, %v1951_v23 }
0x16e0   :  { %v1559_v36 = vadd.f32 0.5, %v1558_v59 }
0x16e2   :  { %v1565_v62 = vmul.f32 %v1563_v61, %v1559_v36  ;;  %v1572_v6 = vsub.f32 1.0, %v1559_v36  ;;  %v1578_v7 = vmul.f32 %v1559_v36, %v1393_v35 }
0x16e4   :  { %1567 = vrot.lane.b32.xlu1 %v1565_v62, %s1986_s16 }
0x1756   :  { %v1568_v63 = vpop.permute.xlu1 %1567 }
0x1757   :  { %v1570_v60 = vadd.f32 %v1568_v63, %v1503_v54 }
0x1759   :  { %1952 = vtanh.f32 %v1570_v60 }
0x1763   :  { %v1953_v3 = vpop.eup %1952 }
0x1764   :  { %1574 = vrot.lane.b32.xlu0 %v1953_v3, %s1987_s20 }
0x17d6   :  { %v1575_v0 = vpop.permute.xlu0 %1574 }
0x17d7   :  { %v1577_v8 = vmul.f32 %v1575_v0, %v1572_v6 }
0x17d9   :  { %v1579_v4 = vadd.f32 %v1578_v7, %v1577_v8 }
0x17db   :  { %1581 = vrot.lane.b32.xlu1 %v1579_v4, %s1987_s20 }
0x184d   :  { %v1582_v21 = vpop.permute.xlu1 %1581 }
0x184e   :  { %1585 = vst.msk [vmem:[#allocation2] sm:$0x3] %vm1584_vm3, %v1582_v21 }
0x184f   :  { %1968 = shalt.err (!%p1965_p4)
}
0x1850   :  { %s1969_s15 = scalar_lea.hbm %s2423_s7, 32 }
0x1851   :  { %p1970_p5 = scmp.ne.s32.totalorder %s2423_s7, %s1969_s15  ;;  %p1973_p6 = scmp.lt.u32.totalorder %s1969_s15, %s2423_s7 }
0x1853   :  { %p1975_p7 = pnand %p1973_p6, %p1970_p5 }
0x1855   :  { %1978 = shalt.err (!%p1975_p7)
}
0x1856   :  { %1595 = dma.vmem_to_hbm [thread:$0]  %s1593_s13, 32, %s2423_s7, [#allocation3]  }
0x1857   :  { %1979 = dma.done.wait [#allocation3], 32  }
0x1858   :  { %1980 = vsyncadd [#allocation3], 4294967264 }
0x1859   :  { %1599 = vsyncpa [#allocation3], 1 }

</bundles_post_ra>
